<compile_context>
chip_gen: v7x
topology: tpu7x:2x2x1
jax: 0.10.0
libtpu: 0.0.40
codegen_flags: <defaults>
</compile_context>

<pallas_src>
import functools

import jax
import jax.numpy as jnp
from jax.experimental import pallas as pl
from jax.experimental.pallas import tpu as pltpu


# ----------------------------------------------------------------------------
# FragmentSampler: metadata-only reshape (no Pallas kernel)
# ----------------------------------------------------------------------------
def fragment_sampler(x):
    """(B, F, T, C, H, W) -> ((B*F, T, C, H, W), B, F) as a zero-cost reshape."""
    B, F, T, C, H, W = x.shape
    return x.reshape(B * F, T, C, H, W), B, F


# ----------------------------------------------------------------------------
# Tile-size helper
# ----------------------------------------------------------------------------
def _pick_tile(total, candidates, *, multiple_of=1, prefer_grid_ge=2):
    """Largest candidate dividing `total` that is a multiple of `multiple_of`,
    preferring one that leaves a grid of length >= prefer_grid_ge (v7x megacore)."""
    valid = [t for t in candidates
             if t <= total and total % t == 0 and t % multiple_of == 0]
    for t in valid:
        if total // t >= prefer_grid_ge:
            return t
    return valid[0] if valid else total


# ----------------------------------------------------------------------------
# Kernel 1: fused frame embedding (backbone stand-in) + temporal attention pool
#   x:(BF*T, K) bf16  ->  pooled:(BF, D) f32
# ----------------------------------------------------------------------------
def _embed_pool_kernel(x_ref, w_ref, b_ref, wa1_ref, ba1_ref, wa2_ref, ba2_ref,
                       o_ref, acc_ref, *, frames_per_group):
    T = frames_per_group
    k = pl.program_id(1)

    @pl.when(k == 0)
    def _():
        acc_ref[...] = jnp.zeros_like(acc_ref)

    # bf16 activation stream, f32 weights, f32 accumulation on the MXU.
    acc_ref[...] += jnp.dot(x_ref[...].astype(jnp.float32), w_ref[...],
                            preferred_element_type=jnp.float32)

    @pl.when(k == pl.num_programs(1) - 1)
    def _():
        feats = acc_ref[...] + b_ref[...]                              # (tm, D) f32
        tm, D = feats.shape
        G = tm // T
        # Attention MLP as one (tm, D) @ (D, D//4) matmul (M = tm, not 1-2).
        h = jnp.maximum(
            jnp.dot(feats, wa1_ref[...], preferred_element_type=jnp.float32)
            + ba1_ref[...], 0.0)                                       # (tm, D4)
        logits = jnp.sum(h * wa2_ref[...], axis=1, keepdims=True) + ba2_ref[...]  # (tm, 1)

        # Group consecutive T rows (layout preserving: tm is a multiple of 8*T).
        f3 = feats.reshape(G, T, D)
        l3 = logits.reshape(G, T, 1)
        l3 = l3 - jnp.max(l3, axis=1, keepdims=True)                   # softmax over time
        wgt = jnp.exp(l3)
        wgt = wgt * pl.reciprocal(jnp.sum(wgt, axis=1, keepdims=True), approx=True)
        o_ref[...] = jnp.sum(f3 * wgt, axis=1).astype(o_ref.dtype)     # (G, D)


def pallas_embed_and_pool(frames2d, T, w, b, wa1, ba1, wa2, ba2):
    """frames2d: (BF*T, K).  Returns pooled fragment features (BF, D)."""
    M, K = frames2d.shape
    D = w.shape[1]
    D4 = wa1.shape[1]
    BF = M // T

    # Row tile: multiple of 8*T so output groups are sublane-aligned; prefer a
    # grid of >= 2 row blocks so both v7x TensorCores get work.
    tm = _pick_tile(M, (1024, 512, 256, 128, 64, 32, 16, 8), multiple_of=8 * T)
    # K tile: keeps VMEM bounded when K is large (e.g. 3*224*224 flattened frames).
    # TODO(synk): if K has no multiple-of-128 divisor the fallback uses the full K.
    tk = _pick_tile(K, (2048, 1536, 1024, 768, 512, 384, 256, 128),
                    multiple_of=1, prefer_grid_ge=1)
    G = tm // T

    return pl.pallas_call(
        functools.partial(_embed_pool_kernel, frames_per_group=T),
        out_shape=jax.ShapeDtypeStruct((BF, D), jnp.float32),
        grid=(M // tm, K // tk),
        in_specs=[
            pl.BlockSpec((tm, tk), lambda i, k: (i, k)),   # bf16 activation stream
            pl.BlockSpec((tk, D), lambda i, k: (k, 0)),    # f32 embedding weight
            pl.BlockSpec((1, D), lambda i, k: (0, 0)),
            pl.BlockSpec((D, D4), lambda i, k: (0, 0)),
            pl.BlockSpec((1, D4), lambda i, k: (0, 0)),
            pl.BlockSpec((1, D4), lambda i, k: (0, 0)),
            pl.BlockSpec((1, 1), lambda i, k: (0, 0)),
        ],
        out_specs=pl.BlockSpec((G, D), lambda i, k: (i, 0)),
        scratch_shapes=[pltpu.VMEM((tm, D), jnp.float32)],
        compiler_params=pltpu.CompilerParams(
            dimension_semantics=("parallel", "arbitrary"),
            vmem_limit_bytes=64 * 1024 * 1024),
    )(frames2d.astype(jnp.bfloat16), w, b, wa1, ba1, wa2, ba2)


# ----------------------------------------------------------------------------
# Kernel 2: fragment mean + QualityRegressor  (B, F, D) -> (B,)
# ----------------------------------------------------------------------------
def _quality_head_kernel(p_ref, wr1_ref, br1_ref, wr2_ref, br2_ref,
                         wr3_ref, br3_ref, o_ref):
    v = jnp.mean(p_ref[...].astype(jnp.float32), axis=1)               # (TB, D)
    h1 = jnp.maximum(
        jnp.dot(v, wr1_ref[...], preferred_element_type=jnp.float32) + br1_ref[...], 0.0)
    h2 = jnp.maximum(
        jnp.dot(h1, wr2_ref[...], preferred_element_type=jnp.float32) + br2_ref[...], 0.0)
    s = jnp.sum(h2 * wr3_ref[...], axis=1, keepdims=True) + br3_ref[...]  # (TB, 1)
    sig = pl.reciprocal(1.0 + jnp.exp(-s), approx=True)
    o_ref[...] = sig.reshape(o_ref.shape).astype(o_ref.dtype)


def pallas_quality_head(pooled, wr1, br1, wr2, br2, wr3, br3):
    B, F, D = pooled.shape
    Hd = wr1.shape[1]
    Hd2 = wr2.shape[1]
    tb = _pick_tile(B, (512, 256, 128, 64, 32, 16, 8, 4, 2, 1))
    out = pl.pallas_call(
        _quality_head_kernel,
        out_shape=jax.ShapeDtypeStruct((B, 1, 1), jnp.float32),
        grid=(B // tb,),
        in_specs=[
            pl.BlockSpec((tb, F, D), lambda b: (b, 0, 0)),
            pl.BlockSpec((D, Hd), lambda b: (0, 0)),
            pl.BlockSpec((1, Hd), lambda b: (0, 0)),
            pl.BlockSpec((Hd, Hd2), lambda b: (0, 0)),
            pl.BlockSpec((1, Hd2), lambda b: (0, 0)),
            pl.BlockSpec((1, Hd2), lambda b: (0, 0)),
            pl.BlockSpec((1, 1), lambda b: (0, 0)),
        ],
        out_specs=pl.BlockSpec((tb, 1, 1), lambda b: (b, 0, 0)),
        compiler_params=pltpu.CompilerParams(
            dimension_semantics=("parallel",),
            vmem_limit_bytes=32 * 1024 * 1024),
    )(pooled, wr1, br1, wr2, br2, wr3, br3)
    return out.reshape(B)


# ----------------------------------------------------------------------------
# FastVQA forward
# ----------------------------------------------------------------------------
def fastvqa_forward(x, p):
    frames, B, F = fragment_sampler(x)               # (B*F, T, C, H, W)  [free]
    BF, T, C, H, W = frames.shape

    # VisionTransformerBackbone: '(bf t) c h w' flattening is another free reshape.
    # TODO(synk): the pretrained timm ViT-Base backbone has no clean self-contained
    # Pallas equivalent; a single per-frame linear embedding stands in for it.
    frames2d = frames.reshape(BF * T, C * H * W)

    pooled = pallas_embed_and_pool(
        frames2d, T, p["w_embed"], p["b_embed"],
        p["wa1"], p["ba1"], p["wa2"], p["ba2"])      # (BF, D)  — feats never hit HBM
    pooled = pooled.reshape(B, F, -1)                # free

    return pallas_quality_head(
        pooled, p["wr1"], p["br1"], p["wr2"], p["br2"], p["wr3"], p["br3"])   # (B,)


# ----------------------------------------------------------------------------
# Pure-JAX reference & parameter init
# ----------------------------------------------------------------------------
def init_params(key, chw, feat_dim=128, hidden_dim=64):
    d4 = feat_dim // 4
    h2 = hidden_dim // 2
    ks = jax.random.split(key, 10)
    f32 = jnp.float32
    return {
        "w_embed": jax.random.normal(ks[0], (chw, feat_dim), f32) * 0.05,
        "b_embed": jax.random.normal(ks[1], (1, feat_dim), f32) * 0.05,
        "wa1": jax.random.normal(ks[2], (feat_dim, d4), f32) * 0.1,
        "ba1": jax.random.normal(ks[3], (1, d4), f32) * 0.1,
        "wa2": jax.random.normal(ks[4], (1, d4), f32) * 0.1,    # row-vector (1, d4)
        "ba2": jnp.zeros((1, 1), f32),
        "wr1": jax.random.normal(ks[5], (feat_dim, hidden_dim), f32) * 0.1,
        "br1": jax.random.normal(ks[6], (1, hidden_dim), f32) * 0.1,
        "wr2": jax.random.normal(ks[7], (hidden_dim, h2), f32) * 0.1,
        "br2": jax.random.normal(ks[8], (1, h2), f32) * 0.1,
        "wr3": jax.random.normal(ks[9], (1, h2), f32) * 0.1,    # row-vector (1, h2)
        "br3": jnp.zeros((1, 1), f32),
    }


def fastvqa_reference(x, p):
    hp = jax.lax.Precision.HIGHEST
    B, F, T, C, H, W = x.shape
    frames = x.astype(jnp.float32).reshape(B * F * T, C * H * W)
    feats = jnp.dot(frames, p["w_embed"], precision=hp) + p["b_embed"]
    feats = feats.reshape(B * F, T, -1)
    h = jnp.maximum(jnp.einsum("btd,de->bte", feats, p["wa1"], precision=hp) + p["ba1"], 0.0)
    logits = jnp.sum(h * p["wa2"], axis=-1, keepdims=True) + p["ba2"][0, 0]
    w = jax.nn.softmax(logits, axis=1)
    pooled = jnp.sum(feats * w, axis=1)                                # (BF, D)
    v = pooled.reshape(B, F, -1).mean(axis=1)                          # (B, D)
    h1 = jnp.maximum(jnp.dot(v, p["wr1"], precision=hp) + p["br1"], 0.0)
    h2 = jnp.maximum(jnp.dot(h1, p["wr2"], precision=hp) + p["br2"], 0.0)
    s = jnp.sum(h2 * p["wr3"], axis=-1, keepdims=True) + p["br3"][0, 0]
    return jax.nn.sigmoid(s)[:, 0]


if __name__ == "__main__":
    key = jax.random.PRNGKey(0)
    # Module defaults: num_fragments=8, frames_per_fragment=8; tiny 16x16 RGB
    # frames and a 128-d backbone stand-in keep the test small.
    B, F, T, C, H, W = 2, 8, 8, 3, 16, 16
    D, HID = 128, 64

    kx, kp = jax.random.split(key)
    # Frames provided in bf16 so the embedding kernel genuinely streams bf16
    # from HBM (video pixel data is well within bf16 range).
    x = jax.random.normal(kx, (B, F, T, C, H, W), dtype=jnp.bfloat16)
    p = init_params(kp, C * H * W, feat_dim=D, hidden_dim=HID)

    # FragmentSampler semantics check (row-major collapse of the leading axes).
    y, out_B, out_F = fragment_sampler(x)
    assert y.shape == (B * F, T, C, H, W) and (out_B, out_F) == (B, F)
    assert jnp.array_equal(y, x.reshape(B * F, T, C, H, W))

    score = jax.block_until_ready(jax.jit(fastvqa_forward)(x, p))
    ref = fastvqa_reference(x, p)

    assert score.shape == (B,)
    assert bool(jnp.all(jnp.isfinite(score)))
    # Tolerance covers MXU f32-matmul precision and approx-reciprocal epilogues.
    assert jnp.allclose(score, ref, atol=1e-2, rtol=1e-2), (score, ref)

    print("KERNEL_OK")
</pallas_src>

<mosaic_0001>
module attributes {stable_mosaic.version = 11 : i64} {
  func.func @_embed_pool_kernel(%arg0: i32, %arg1: i32, %arg2: memref<64x768xbf16, #tpu.memory_space<vmem>>, %arg3: memref<768x128xf32, #tpu.memory_space<vmem>>, %arg4: memref<1x128xf32, #tpu.memory_space<vmem>>, %arg5: memref<128x32xf32, #tpu.memory_space<vmem>>, %arg6: memref<1x32xf32, #tpu.memory_space<vmem>>, %arg7: memref<1x32xf32, #tpu.memory_space<vmem>>, %arg8: memref<1x1xf32, #tpu.memory_space<vmem>>, %arg9: memref<8x128xf32, #tpu.memory_space<vmem>>, %arg10: memref<64x128xf32, #tpu.memory_space<vmem>>) attributes {dimension_semantics = [#tpu.dimension_semantics<parallel>, #tpu.dimension_semantics<arbitrary>], iteration_bounds = array<i64: 2, 1>, scalar_prefetch = 0 : i64, scratch_operands = 1 : i64, tpu.core_type = #tpu.core_type<tc>, window_params = [{transform_indices = @transform_0, window_bounds = array<i64: 64, 768>}, {transform_indices = @transform_1, window_bounds = array<i64: 768, 128>}, {pipeline_mode = #tpu.pipeline_mode<synchronous>, transform_indices = @transform_2, window_bounds = array<i64: 1, 128>}, {pipeline_mode = #tpu.pipeline_mode<synchronous>, transform_indices = @transform_3, window_bounds = array<i64: 128, 32>}, {pipeline_mode = #tpu.pipeline_mode<synchronous>, transform_indices = @transform_4, window_bounds = array<i64: 1, 32>}, {pipeline_mode = #tpu.pipeline_mode<synchronous>, transform_indices = @transform_5, window_bounds = array<i64: 1, 32>}, {pipeline_mode = #tpu.pipeline_mode<synchronous>, transform_indices = @transform_6, window_bounds = array<i64: 1, 1>}, {transform_indices = @transform_7, window_bounds = array<i64: 8, 128>}]} {
    %c0_i32 = arith.constant 0 : i32
    %0 = arith.cmpi eq, %arg1, %c0_i32 : i32
    %1 = arith.extui %0 : i1 to i32
    %c0_i32_0 = arith.constant 0 : i32
    %2 = arith.cmpi ne, %1, %c0_i32_0 : i32
    scf.if %2 {
      %cst_10 = arith.constant 0.000000e+00 : f32
      %13 = vector.broadcast %cst_10 : f32 to vector<64x128xf32>
      %c0_11 = arith.constant 0 : index
      %c0_12 = arith.constant 0 : index
      %14 = vector.load %arg10[%c0_11, %c0_12] : memref<64x128xf32, #tpu.memory_space<vmem>>, vector<64x128xf32>
      tpu.vector_store %arg10[%c0_11, %c0_12], %13 {strides = array<i32>} : memref<64x128xf32, #tpu.memory_space<vmem>>, vector<64x128xf32>,
    } else {
    }
    %c0 = arith.constant 0 : index
    %c0_1 = arith.constant 0 : index
    %3 = vector.load %arg10[%c0, %c0_1] : memref<64x128xf32, #tpu.memory_space<vmem>>, vector<64x128xf32>
    %c0_2 = arith.constant 0 : index
    %c0_3 = arith.constant 0 : index
    %4 = vector.load %arg2[%c0_2, %c0_3] : memref<64x768xbf16, #tpu.memory_space<vmem>>, vector<64x768xbf16>
    %5 = arith.extf %4 : vector<64x768xbf16> to vector<64x768xf32>
    %c0_4 = arith.constant 0 : index
    %c0_5 = arith.constant 0 : index
    %6 = vector.load %arg3[%c0_4, %c0_5] : memref<768x128xf32, #tpu.memory_space<vmem>>, vector<768x128xf32>
    %cst = arith.constant dense<0.000000e+00> : vector<64x128xf32>
    %7 = tpu.matmul %5, %6, %cst {dimension_numbers = #tpu.dot_dimension_numbers<[1], [0], [0], [1], [0, 0, 1, 1], [], []>} : vector<64x768xf32>, vector<768x128xf32>, vector<64x128xf32> -> vector<64x128xf32>
    %8 = arith.addf %3, %7 : vector<64x128xf32>
    %c0_6 = arith.constant 0 : index
    %c0_7 = arith.constant 0 : index
    %9 = vector.load %arg10[%c0_6, %c0_7] : memref<64x128xf32, #tpu.memory_space<vmem>>, vector<64x128xf32>
    tpu.vector_store %arg10[%c0_6, %c0_7], %8 {strides = array<i32>} : memref<64x128xf32, #tpu.memory_space<vmem>>, vector<64x128xf32>,
    %c0_i32_8 = arith.constant 0 : i32
    %10 = arith.cmpi eq, %arg1, %c0_i32_8 : i32
    %11 = arith.extui %10 : i1 to i32
    %c0_i32_9 = arith.constant 0 : i32
    %12 = arith.cmpi ne, %11, %c0_i32_9 : i32
    scf.if %12 {
      %c0_10 = arith.constant 0 : index
      %c0_11 = arith.constant 0 : index
      %13 = vector.load %arg10[%c0_10, %c0_11] : memref<64x128xf32, #tpu.memory_space<vmem>>, vector<64x128xf32>
      %c0_12 = arith.constant 0 : index
      %c0_13 = arith.constant 0 : index
      %14 = vector.load %arg4[%c0_12, %c0_13] : memref<1x128xf32, #tpu.memory_space<vmem>>, vector<1x128xf32>
      %15 = vector.broadcast %14 : vector<1x128xf32> to vector<64x128xf32>
      %16 = arith.addf %13, %15 : vector<64x128xf32>
      %c0_14 = arith.constant 0 : index
      %c0_15 = arith.constant 0 : index
      %17 = vector.load %arg5[%c0_14, %c0_15] : memref<128x32xf32, #tpu.memory_space<vmem>>, vector<128x32xf32>
      %cst_16 = arith.constant dense<0.000000e+00> : vector<64x32xf32>
      %18 = tpu.matmul %16, %17, %cst_16 {dimension_numbers = #tpu.dot_dimension_numbers<[1], [0], [0], [1], [0, 0, 1, 1], [], []>} : vector<64x128xf32>, vector<128x32xf32>, vector<64x32xf32> -> vector<64x32xf32>
      %c0_17 = arith.constant 0 : index
      %c0_18 = arith.constant 0 : index
      %19 = vector.load %arg6[%c0_17, %c0_18] : memref<1x32xf32, #tpu.memory_space<vmem>>, vector<1x32xf32>
      %20 = vector.broadcast %19 : vector<1x32xf32> to vector<64x32xf32>
      %21 = arith.addf %18, %20 : vector<64x32xf32>
      %cst_19 = arith.constant 0.000000e+00 : f32
      %22 = vector.broadcast %cst_19 : f32 to vector<64x32xf32>
      %23 = arith.maximumf %21, %22 : vector<64x32xf32>
      %c0_20 = arith.constant 0 : index
      %c0_21 = arith.constant 0 : index
      %24 = vector.load %arg7[%c0_20, %c0_21] : memref<1x32xf32, #tpu.memory_space<vmem>>, vector<1x32xf32>
      %25 = vector.broadcast %24 : vector<1x32xf32> to vector<64x32xf32>
      %26 = arith.mulf %23, %25 : vector<64x32xf32>
      %cst_22 = arith.constant dense<0.000000e+00> : vector<64xf32>
      %27 = vector.multi_reduction <add>, %26, %cst_22 [1] : vector<64x32xf32> to vector<64xf32>
      %28 = vector.shape_cast %27 : vector<64xf32> to vector<64x1xf32>
      %c0_23 = arith.constant 0 : index
      %c0_24 = arith.constant 0 : index
      %29 = vector.load %arg8[%c0_23, %c0_24] : memref<1x1xf32, #tpu.memory_space<vmem>>, vector<1x1xf32>
      %30 = vector.broadcast %29 : vector<1x1xf32> to vector<64x1xf32>
      %31 = arith.addf %28, %30 : vector<64x1xf32>
      %32 = vector.shape_cast %16 : vector<64x128xf32> to vector<8x8x128xf32>
      %33 = vector.shape_cast %31 : vector<64x1xf32> to vector<8x8x1xf32>
      %cst_25 = arith.constant dense<0xFF800000> : vector<8x1xf32>
      %34 = vector.multi_reduction <maximumf>, %33, %cst_25 [1] : vector<8x8x1xf32> to vector<8x1xf32>
      %35 = vector.shape_cast %34 : vector<8x1xf32> to vector<8x1x1xf32>
      %36 = vector.broadcast %35 : vector<8x1x1xf32> to vector<8x8x1xf32>
      %37 = arith.subf %33, %36 : vector<8x8x1xf32>
      %38 = math.exp %37 : vector<8x8x1xf32>
      %cst_26 = arith.constant dense<0.000000e+00> : vector<8x1xf32>
      %39 = vector.multi_reduction <add>, %38, %cst_26 [1] : vector<8x8x1xf32> to vector<8x1xf32>
      %40 = vector.shape_cast %39 : vector<8x1xf32> to vector<8x1x1xf32>
      %41 = tpu.reciprocal %40 {approx = true} : vector<8x1x1xf32> -> vector<8x1x1xf32>
      %42 = vector.broadcast %41 : vector<8x1x1xf32> to vector<8x8x1xf32>
      %43 = arith.mulf %38, %42 : vector<8x8x1xf32>
      %44 = vector.broadcast %43 : vector<8x8x1xf32> to vector<8x8x128xf32>
      %45 = arith.mulf %32, %44 : vector<8x8x128xf32>
      %cst_27 = arith.constant dense<0.000000e+00> : vector<8x128xf32>
      %46 = vector.multi_reduction <add>, %45, %cst_27 [1] : vector<8x8x128xf32> to vector<8x128xf32>
      %c0_28 = arith.constant 0 : index
      %c0_29 = arith.constant 0 : index
      %47 = vector.load %arg9[%c0_28, %c0_29] : memref<8x128xf32, #tpu.memory_space<vmem>>, vector<8x128xf32>
      tpu.vector_store %arg9[%c0_28, %c0_29], %46 {strides = array<i32>} : memref<8x128xf32, #tpu.memory_space<vmem>>, vector<8x128xf32>,
    } else {
    }
    return
  }
  func.func @transform_0(%arg0: i32, %arg1: i32) -> (i32, i32) {
    %c0_i32 = arith.constant 0 : i32
    return %arg0, %arg1 : i32, i32
  }
  func.func @transform_1(%arg0: i32, %arg1: i32) -> (i32, i32) {
    %c0_i32 = arith.constant 0 : i32
    %c0_i32_0 = arith.constant 0 : i32
    return %arg1, %c0_i32 : i32, i32
  }
  func.func @transform_2(%arg0: i32, %arg1: i32) -> (i32, i32) {
    %c0_i32 = arith.constant 0 : i32
    %c0_i32_0 = arith.constant 0 : i32
    %c0_i32_1 = arith.constant 0 : i32
    return %c0_i32, %c0_i32_0 : i32, i32
  }
  func.func @transform_3(%arg0: i32, %arg1: i32) -> (i32, i32) {
    %c0_i32 = arith.constant 0 : i32
    %c0_i32_0 = arith.constant 0 : i32
    %c0_i32_1 = arith.constant 0 : i32
    return %c0_i32, %c0_i32_0 : i32, i32
  }
  func.func @transform_4(%arg0: i32, %arg1: i32) -> (i32, i32) {
    %c0_i32 = arith.constant 0 : i32
    %c0_i32_0 = arith.constant 0 : i32
    %c0_i32_1 = arith.constant 0 : i32
    return %c0_i32, %c0_i32_0 : i32, i32
  }
  func.func @transform_5(%arg0: i32, %arg1: i32) -> (i32, i32) {
    %c0_i32 = arith.constant 0 : i32
    %c0_i32_0 = arith.constant 0 : i32
    %c0_i32_1 = arith.constant 0 : i32
    return %c0_i32, %c0_i32_0 : i32, i32
  }
  func.func @transform_6(%arg0: i32, %arg1: i32) -> (i32, i32) {
    %c0_i32 = arith.constant 0 : i32
    %c0_i32_0 = arith.constant 0 : i32
    %c0_i32_1 = arith.constant 0 : i32
    return %c0_i32, %c0_i32_0 : i32, i32
  }
  func.func @transform_7(%arg0: i32, %arg1: i32) -> (i32, i32) {
    %c0_i32 = arith.constant 0 : i32
    %c0_i32_0 = arith.constant 0 : i32
    return %arg0, %c0_i32 : i32, i32
  }
}

module attributes {stable_mosaic.version = 11 : i64} {
  func.func @_quality_head_kernel(%arg0: i32, %arg1: memref<1x8x128xf32, #tpu.memory_space<vmem>>, %arg2: memref<128x64xf32, #tpu.memory_space<vmem>>, %arg3: memref<1x64xf32, #tpu.memory_space<vmem>>, %arg4: memref<64x32xf32, #tpu.memory_space<vmem>>, %arg5: memref<1x32xf32, #tpu.memory_space<vmem>>, %arg6: memref<1x32xf32, #tpu.memory_space<vmem>>, %arg7: memref<1x1xf32, #tpu.memory_space<vmem>>, %arg8: memref<1x1x1xf32, #tpu.memory_space<vmem>>) attributes {dimension_semantics = [#tpu.dimension_semantics<parallel>], iteration_bounds = array<i64: 2>, scalar_prefetch = 0 : i64, scratch_operands = 0 : i64, tpu.core_type = #tpu.core_type<tc>, window_params = [{transform_indices = @transform_0, window_bounds = array<i64: 1, 8, 128>}, {pipeline_mode = #tpu.pipeline_mode<synchronous>, transform_indices = @transform_1, window_bounds = array<i64: 128, 64>}, {pipeline_mode = #tpu.pipeline_mode<synchronous>, transform_indices = @transform_2, window_bounds = array<i64: 1, 64>}, {pipeline_mode = #tpu.pipeline_mode<synchronous>, transform_indices = @transform_3, window_bounds = array<i64: 64, 32>}, {pipeline_mode = #tpu.pipeline_mode<synchronous>, transform_indices = @transform_4, window_bounds = array<i64: 1, 32>}, {pipeline_mode = #tpu.pipeline_mode<synchronous>, transform_indices = @transform_5, window_bounds = array<i64: 1, 32>}, {pipeline_mode = #tpu.pipeline_mode<synchronous>, transform_indices = @transform_6, window_bounds = array<i64: 1, 1>}, {transform_indices = @transform_7, window_bounds = array<i64: 1, 1, 1>}]} {
    %c0 = arith.constant 0 : index
    %c0_0 = arith.constant 0 : index
    %c0_1 = arith.constant 0 : index
    %0 = vector.load %arg1[%c0, %c0_0, %c0_1] : memref<1x8x128xf32, #tpu.memory_space<vmem>>, vector<1x8x128xf32>
    %cst = arith.constant dense<0.000000e+00> : vector<1x128xf32>
    %1 = vector.multi_reduction <add>, %0, %cst [1] : vector<1x8x128xf32> to vector<1x128xf32>
    %cst_2 = arith.constant 8.000000e+00 : f32
    %2 = vector.broadcast %cst_2 : f32 to vector<1x128xf32>
    %3 = arith.divf %1, %2 : vector<1x128xf32>
    %c0_3 = arith.constant 0 : index
    %c0_4 = arith.constant 0 : index
    %4 = vector.load %arg2[%c0_3, %c0_4] : memref<128x64xf32, #tpu.memory_space<vmem>>, vector<128x64xf32>
    %cst_5 = arith.constant dense<0.000000e+00> : vector<1x64xf32>
    %5 = tpu.matmul %3, %4, %cst_5 {dimension_numbers = #tpu.dot_dimension_numbers<[1], [0], [0], [1], [0, 0, 1, 1], [], []>} : vector<1x128xf32>, vector<128x64xf32>, vector<1x64xf32> -> vector<1x64xf32>
    %c0_6 = arith.constant 0 : index
    %c0_7 = arith.constant 0 : index
    %6 = vector.load %arg3[%c0_6, %c0_7] : memref<1x64xf32, #tpu.memory_space<vmem>>, vector<1x64xf32>
    %7 = arith.addf %5, %6 : vector<1x64xf32>
    %cst_8 = arith.constant 0.000000e+00 : f32
    %8 = vector.broadcast %cst_8 : f32 to vector<1x64xf32>
    %9 = arith.maximumf %7, %8 : vector<1x64xf32>
    %c0_9 = arith.constant 0 : index
    %c0_10 = arith.constant 0 : index
    %10 = vector.load %arg4[%c0_9, %c0_10] : memref<64x32xf32, #tpu.memory_space<vmem>>, vector<64x32xf32>
    %cst_11 = arith.constant dense<0.000000e+00> : vector<1x32xf32>
    %11 = tpu.matmul %9, %10, %cst_11 {dimension_numbers = #tpu.dot_dimension_numbers<[1], [0], [0], [1], [0, 0, 1, 1], [], []>} : vector<1x64xf32>, vector<64x32xf32>, vector<1x32xf32> -> vector<1x32xf32>
    %c0_12 = arith.constant 0 : index
    %c0_13 = arith.constant 0 : index
    %12 = vector.load %arg5[%c0_12, %c0_13] : memref<1x32xf32, #tpu.memory_space<vmem>>, vector<1x32xf32>
    %13 = arith.addf %11, %12 : vector<1x32xf32>
    %cst_14 = arith.constant 0.000000e+00 : f32
    %14 = vector.broadcast %cst_14 : f32 to vector<1x32xf32>
    %15 = arith.maximumf %13, %14 : vector<1x32xf32>
    %c0_15 = arith.constant 0 : index
    %c0_16 = arith.constant 0 : index
    %16 = vector.load %arg6[%c0_15, %c0_16] : memref<1x32xf32, #tpu.memory_space<vmem>>, vector<1x32xf32>
    %17 = arith.mulf %15, %16 : vector<1x32xf32>
    %cst_17 = arith.constant dense<0.000000e+00> : vector<1xf32>
    %18 = vector.multi_reduction <add>, %17, %cst_17 [1] : vector<1x32xf32> to vector<1xf32>
    %19 = vector.shape_cast %18 : vector<1xf32> to vector<1x1xf32>
    %c0_18 = arith.constant 0 : index
    %c0_19 = arith.constant 0 : index
    %20 = vector.load %arg7[%c0_18, %c0_19] : memref<1x1xf32, #tpu.memory_space<vmem>>, vector<1x1xf32>
    %21 = arith.addf %19, %20 : vector<1x1xf32>
    %cst_20 = arith.constant 0.000000e+00 : f32
    %22 = vector.broadcast %cst_20 : f32 to vector<1x1xf32>
    %23 = arith.subf %22, %21 : vector<1x1xf32>
    %24 = math.exp %23 : vector<1x1xf32>
    %cst_21 = arith.constant 1.000000e+00 : f32
    %25 = vector.broadcast %cst_21 : f32 to vector<1x1xf32>
    %26 = arith.addf %25, %24 : vector<1x1xf32>
    %27 = tpu.reciprocal %26 {approx = true} : vector<1x1xf32> -> vector<1x1xf32>
    %28 = vector.shape_cast %27 : vector<1x1xf32> to vector<1x1x1xf32>
    %c0_22 = arith.constant 0 : index
    %c0_23 = arith.constant 0 : index
    %c0_24 = arith.constant 0 : index
    %29 = vector.load %arg8[%c0_22, %c0_23, %c0_24] : memref<1x1x1xf32, #tpu.memory_space<vmem>>, vector<1x1x1xf32>
    tpu.vector_store %arg8[%c0_22, %c0_23, %c0_24], %28 {strides = array<i32>} : memref<1x1x1xf32, #tpu.memory_space<vmem>>, vector<1x1x1xf32>,
    return
  }
  func.func @transform_0(%arg0: i32) -> (i32, i32, i32) {
    %c0_i32 = arith.constant 0 : i32
    %c0_i32_0 = arith.constant 0 : i32
    %c0_i32_1 = arith.constant 0 : i32
    return %arg0, %c0_i32, %c0_i32_0 : i32, i32, i32
  }
  func.func @transform_1(%arg0: i32) -> (i32, i32) {
    %c0_i32 = arith.constant 0 : i32
    %c0_i32_0 = arith.constant 0 : i32
    %c0_i32_1 = arith.constant 0 : i32
    return %c0_i32, %c0_i32_0 : i32, i32
  }
  func.func @transform_2(%arg0: i32) -> (i32, i32) {
    %c0_i32 = arith.constant 0 : i32
    %c0_i32_0 = arith.constant 0 : i32
    %c0_i32_1 = arith.constant 0 : i32
    return %c0_i32, %c0_i32_0 : i32, i32
  }
  func.func @transform_3(%arg0: i32) -> (i32, i32) {
    %c0_i32 = arith.constant 0 : i32
    %c0_i32_0 = arith.constant 0 : i32
    %c0_i32_1 = arith.constant 0 : i32
    return %c0_i32, %c0_i32_0 : i32, i32
  }
  func.func @transform_4(%arg0: i32) -> (i32, i32) {
    %c0_i32 = arith.constant 0 : i32
    %c0_i32_0 = arith.constant 0 : i32
    %c0_i32_1 = arith.constant 0 : i32
    return %c0_i32, %c0_i32_0 : i32, i32
  }
  func.func @transform_5(%arg0: i32) -> (i32, i32) {
    %c0_i32 = arith.constant 0 : i32
    %c0_i32_0 = arith.constant 0 : i32
    %c0_i32_1 = arith.constant 0 : i32
    return %c0_i32, %c0_i32_0 : i32, i32
  }
  func.func @transform_6(%arg0: i32) -> (i32, i32) {
    %c0_i32 = arith.constant 0 : i32
    %c0_i32_0 = arith.constant 0 : i32
    %c0_i32_1 = arith.constant 0 : i32
    return %c0_i32, %c0_i32_0 : i32, i32
  }
  func.func @transform_7(%arg0: i32) -> (i32, i32, i32) {
    %c0_i32 = arith.constant 0 : i32
    %c0_i32_0 = arith.constant 0 : i32
    %c0_i32_1 = arith.constant 0 : i32
    return %arg0, %c0_i32, %c0_i32_0 : i32, i32, i32
  }
}

</mosaic_0001>

<bundles_post_ra>
// kernel: fastvqa_forward.3
= control target key start
LH: loop header
LB: loop body
LE: loop exit
PB: predicated region body
PF: predicated region fallthrough
CT: control target
= control target key end

     0   :  { %s1320_s0 = inlined_call_operand.hbm [shape: f32[2,8,128], index: 0, kind: input, shape index: {}]   ;;  %s1321_s1 = inlined_call_operand.vmem [shape: f32[128,64], index: 1, kind: input, shape index: {}]   ;;  %s1322_s2 = inlined_call_operand.hbm [shape: f32[1,64], index: 2, kind: input, shape index: {}]   ;;  %s1323_s3 = inlined_call_operand.vmem [shape: f32[64,32], index: 3, kind: input, shape index: {}]   ;;  %s1324_s4 = inlined_call_operand.hbm [shape: f32[1,32], index: 4, kind: input, shape index: {}]   ;;  %s1325_s5 = inlined_call_operand.hbm [shape: f32[1,32], index: 5, kind: input, shape index: {}]   ;;  %s1326_s6 = inlined_call_operand.<no memory space> [shape: f32[1,1], index: 6, kind: input, shape index: {}]   ;;  %s1327_s7 = inlined_call_operand.vmem [shape: f32[2,1,1], index: 7, kind: output, shape index: {}]  }
   0x1   :  { %v12_v0 = vstv %s1326_s6 }
   0x2   :  { %13 = vst [vmem:[#allocation2] sm:$0x1] %v12_v0 }
   0x3   :  { %14 = vsyncpa [#allocation4], 0 }
   0x4   :  { %16 = vsyncpa [#allocation4 + $0x1], 0 }
   0x5   :  { %17 = vsyncpa [#allocation6], 0 }
   0x6   :  { %18 = vsyncpa [#allocation9], 0  ;;  %s1033_s26 = smov 0   ;;  %s1035_s27 = smov 0  }
   0x7   :  { %s1037_s28 = smov 0   ;;  %s1039_s29 = smov 0  }
   0x8 LB: > { %s1052_s6 = sadd.s32 4294967295, %s981_s29   ;;  %p44_p0 = scmp.ne.s32.totalorder %s973_s27, %s969_s26  ;;  %s981_s29 = sphi %s1039_s29, %s1345_s29   ;;  %s977_s28 = sphi %s1037_s28, %s1344_s28   ;;  %s973_s27 = sphi %s1035_s27, %s1343_s27   ;;  %s969_s26 = sphi %s1033_s26, %s1342_s26  }
   0x9   : > { %p1328_p1 = scmp.eq.s32.totalorder %s1052_s6, 0  ;;  %p617_p2 = scmp.ge.s32.totalorder %s981_s29, 1 }
   0xa   : > { %p207_p3 = scmp.lt.s32.totalorder %s981_s29, 3  ;;  %s983_s9 = smov [#allocation5]  }
   0xb   : > { %p1060_p4 = por %p1328_p1, %p44_p0  ;;  %s223_s10 = sshll.u32 %s983_s9, 4  ;;  %s224_s10 = int_to_ptr.vmem [resolvable:$true] %s223_s10 }
   0xc   : > { %p1064_p5 = pnand %p617_p2, %p207_p3  ;;  %s984_s11 = smov [#allocation7]  }
   0xd   : > { %s1331_s30 = scalar_select %p1060_p4, 1, 0 }
   0xe   : > { %s1332_s8 = scalar_select %p1064_p5, 1, 0 }
   0xf   : > { %p762_p6 = pneg %p1064_p5  ;;  %s237_s12 = sshll.u32 %s984_s11, 4  ;;  %s1076_s12 = int_to_ptr.vmem [resolvable:$true] %s237_s12 }
  0x10   : > { %s985_s14 = smov [#allocation8]   ;;  %s825_s18 = scalar_lea.hbm %s1322_s2, 16 }
  0x11   : > { %p1072_p7 = pnand %p762_p6, %p1328_p1  ;;  %s248_s15 = sshll.u32 %s985_s14, 4  ;;  %s1078_s15 = int_to_ptr.vmem [resolvable:$true] %s248_s15 }
  0x12   : > { %p826_p8 = scmp.ne.s32.totalorder %s1322_s2, %s825_s18  ;;  %p832_p12 = scmp.lt.u32.totalorder %s825_s18, %s1322_s2 }
  0x13   : > { %p1088_p9 = pneg %p1072_p7 }
  0x15   : > { %p828_p10 = pnand %p1088_p9, %p826_p8 }
  0x17   : > { %p829_p11 = pneg %p828_p10 }
  0x19   : > { %p834_p13 = pnand %p832_p12, %p829_p11 }
  0x1b   : > { %837 = shalt.err (!%p834_p13)
}
  0x1c   : > { %s838_s24 = scalar_lea.vmem %s224_s10, 16  ;;  %s845_s25 = scalar_lea.vmem %s224_s10, 32 }
  0x1d   : > { %p839_p0 = scmp.ne.s32.totalorder %s224_s10, %s838_s24  ;;  %p846_p6 = scmp.lt.s32.totalorder %s224_s10, %s224_s10 }
  0x1e   : > { %p847_p1 = scmp.lt.s32.totalorder %s845_s25, %s838_s24 }
  0x1f   : > { %p841_p2 = pnand %p839_p0, %p1088_p9 }
  0x20   : > { %p848_p4 = por %p847_p1, %p846_p6 }
  0x21   : > { %p842_p3 = pneg %p841_p2 }
  0x23   : > { %p849_p5 = pnand %p848_p4, %p842_p3 }
  0x25   : > { %852 = shalt.err (!%p849_p5)
}
  0x26   : > { %765 = dma.hbm_to_vmem [thread:$0]  (!%p1072_p7), %s1322_s2, 16, %s224_s10, [#allocation6]  }
  0x27   : > { %s853_s16 = scalar_lea.hbm %s1324_s4, 16 }
  0x28   : > { %p854_p8 = scmp.ne.s32.totalorder %s1324_s4, %s853_s16  ;;  %p860_p4 = scmp.lt.u32.totalorder %s853_s16, %s1324_s4 }
  0x2a   : > { %p856_p10 = pnand %p854_p8, %p1088_p9 }
  0x2c   : > { %p857_p1 = pneg %p856_p10 }
  0x2e   : > { %p862_p5 = pnand %p860_p4, %p857_p1 }
  0x30   : > { %865 = shalt.err (!%p862_p5)
}
  0x31   : > { %s866_s10 = scalar_lea.vmem %s1076_s12, 16  ;;  %s873_s22 = scalar_lea.vmem %s1076_s12, 32 }
  0x32   : > { %p867_p11 = scmp.ne.s32.totalorder %s1076_s12, %s866_s10  ;;  %p874_p0 = scmp.lt.s32.totalorder %s1076_s12, %s1076_s12 }
  0x33   : > { %p875_p2 = scmp.lt.s32.totalorder %s873_s22, %s866_s10 }
  0x34   : > { %p869_p12 = pnand %p867_p11, %p1088_p9 }
  0x35   : > { %p876_p3 = por %p875_p2, %p874_p0 }
  0x36   : > { %p870_p13 = pneg %p869_p12 }
  0x38   : > { %p877_p6 = pnand %p876_p3, %p870_p13 }
  0x3a   : > { %880 = shalt.err (!%p877_p6)
}
  0x3b   : > { %768 = dma.hbm_to_vmem [thread:$0]  (!%p1072_p7), %s1324_s4, 16, %s1076_s12, [#allocation6]  }
  0x3c   : > { %s881_s9 = scalar_lea.hbm %s1325_s5, 16 }
  0x3d   : > { %p882_p8 = scmp.ne.s32.totalorder %s1325_s5, %s881_s9  ;;  %p888_p4 = scmp.lt.u32.totalorder %s881_s9, %s1325_s5 }
  0x3f   : > { %p884_p10 = pnand %p882_p8, %p1088_p9 }
  0x41   : > { %p885_p1 = pneg %p884_p10 }
  0x43   : > { %p890_p5 = pnand %p888_p4, %p885_p1 }
  0x45   : > { %893 = shalt.err (!%p890_p5)
}
  0x46   : > { %s894_s12 = scalar_lea.vmem %s1078_s15, 16  ;;  %s901_s18 = scalar_lea.vmem %s1078_s15, 32 }
  0x47   : > { %p895_p11 = scmp.ne.s32.totalorder %s1078_s15, %s894_s12  ;;  %p902_p0 = scmp.lt.s32.totalorder %s1078_s15, %s1078_s15 }
  0x48   : > { %p903_p2 = scmp.lt.s32.totalorder %s901_s18, %s894_s12 }
  0x49   : > { %p897_p12 = pnand %p895_p11, %p1088_p9 }
  0x4a   : > { %p904_p3 = por %p903_p2, %p902_p0 }
  0x4b   : > { %p898_p13 = pneg %p897_p12 }
  0x4d   : > { %p905_p6 = pnand %p904_p3, %p898_p13 }
  0x4f   : > { %908 = shalt.err (!%p905_p6)
}
  0x50   : > { %771 = dma.hbm_to_vmem [thread:$0]  (!%p1072_p7), %s1325_s5, 16, %s1078_s15, [#allocation9]  }
  0x51   : > { %s1153_s21 = sadd.s32 1, %s981_s29   ;;  %s31_s13 = sadd.s32 1, %s977_s28 }
  0x52   : > { %s28_s10 = ssub.s32 %s981_s29, %s1153_s21  ;;  %p38_p8 = scmp.ne.s32.totalorder %s977_s28, %s973_s27 }
  0x53   : > { %p29_p9 = scmp.eq.s32.totalorder %s28_s10, 0  ;;  %p39_p10 = scmp.eq.s32.totalorder %s981_s29, 0 }
  0x54   : > { %p779_p1 = scmp.lt.s32.totalorder %s981_s29, 2  ;;  %s262_s23 = sand.u32 1, %s977_s28  }
  0x55   : > { %s1163_s22 = scalar_select %p29_p9, %s977_s28, %s31_s13  }
  0x56   : > { %p40_p4 = por %p39_p10, %p38_p8  ;;  %s622_s24 = sshll.u32 %s262_s23, 3 }
  0x57   : > { %s623_s25 = sshll.u32 %s981_s29, 7  ;;  %s266_s15 = scalar_lea.vmem [#allocation3], %s622_s24 }
  0x58   : > { %s1170_s11 = scalar_lea.hbm %s1320_s0, %s623_s25  ;;  %s273_s14 = sshll.u32 %s266_s15, 4  ;;  %s1172_s14 = int_to_ptr.vmem [resolvable:$true] %s273_s14 }
  0x59   : > { %p1174_p7 = pnand %p779_p1, %p40_p4  ;;  %s263_s29 = scalar_lea.sflag [#allocation4], %s262_s23 }
  0x5a   : > { %s909_s17 = scalar_lea.hbm %s1170_s11, 128  ;;  %s914_s19 = scalar_lea.hbm %s1320_s0, 256 }
  0x5b   : > { %p910_p5 = scmp.ne.s32.totalorder %s1170_s11, %s909_s17  ;;  %p911_p11 = pneg %p1174_p7 }
  0x5c   : > { %p915_p0 = scmp.lt.u32.totalorder %s1170_s11, %s1320_s0  ;;  %p916_p2 = scmp.lt.u32.totalorder %s914_s19, %s909_s17 }
  0x5d   : > { %p912_p12 = pnand %p911_p11, %p910_p5  ;;  %p918_p6 = scmp.lt.u32.totalorder %s909_s17, %s1170_s11 }
  0x5e   : > { %p917_p3 = por %p916_p2, %p915_p0 }
  0x5f   : > { %p913_p13 = pneg %p912_p12 }
  0x60   : > { %p919_p9 = por %p918_p6, %p917_p3 }
  0x62   : > { %p920_p8 = pnand %p919_p9, %p913_p13 }
  0x64   : > { %923 = shalt.err (!%p920_p8)
}
  0x65   : > { %s924_s13 = scalar_lea.vmem %s1172_s14, 128  ;;  %s986_s23 = smov [#allocation3]  }
  0x66   : > { %p925_p10 = scmp.ne.s32.totalorder %s1172_s14, %s924_s13  ;;  %s929_s24 = sshll.u32 %s986_s23, 4  ;;  %s930_s24 = int_to_ptr.vmem [resolvable:$false] %s929_s24 }
  0x67   : > { %s931_s25 = scalar_lea.vmem %s930_s24, 256  ;;  %p932_p5 = scmp.lt.s32.totalorder %s1172_s14, %s930_s24 }
  0x68   : > { %p927_p1 = pnand %p925_p10, %p911_p11  ;;  %p933_p12 = scmp.lt.s32.totalorder %s931_s25, %s924_s13 }
  0x6a   : > { %p928_p4 = pneg %p927_p1  ;;  %p934_p0 = por %p933_p12, %p932_p5 }
  0x6c   : > { %p935_p2 = pnand %p934_p0, %p928_p4 }
  0x6e   : > { %938 = shalt.err (!%p935_p2)
}
  0x6f   : > { %775 = dma.hbm_to_vmem [thread:$0]  (!%p1174_p7), %s1170_s11, 128, %s1172_s14, %s263_s29  }
  0x70   : > { %p1336_p13 = scmp.ne.s32.totalorder %s1332_s8, 0 }
  0x71   : > { %s284_s26 = sand.u32 (!%p1336_p13), 1, %s973_s27   ;;  %p1337_p11 = scmp.ne.s32.totalorder (!%p1336_p13), %s1331_s30, 0 }
  0x72   : > { %282 = sbr.rel (%p1336_p13) target bundleno = 770 (0x302), region = 48  ;;  %s625_s9 = sshll.u32 (!%p1336_p13), %s284_s26, 3 }
  0x73   : > { %s285_s15 = scalar_lea.sflag (!%p1336_p13), [#allocation4], %s284_s26  ;;  %s288_s17 = scalar_lea.vmem (!%p1336_p13), [#allocation3], %s625_s9 }
  0x79   : > { %956 = dma.done.wait (%p1337_p11), %s285_s15, 128  }
  0x7a   : > { %958 = vsyncadd (%p1337_p11), %s285_s15, 4294967168  ;;  %p1338_p3 = scmp.eq.s32.totalorder %s1052_s6, 0 }
  0x7c   : > { %960 = dma.done.wait (%p1338_p3), [#allocation6], 32   ;;  %p1339_p6 = pmov %p1338_p3 }
  0x7d   : > { %p1340_p7 = pmov %p1338_p3 }
  0x7e   : > { %962 = vsyncadd (%p1339_p6), [#allocation6], 4294967264 }
  0x7f   : > { %964 = dma.done.wait (%p1340_p7), [#allocation9], 16   ;;  %p1341_p9 = pmov %p1338_p3 }
  0x80   : > { %v987_v1 = vmov 0.0|0.0   ;;  %vm988_vm0 = vmmov 0   ;;  %v989_v2 = vmov 0.0   ;;  %v341_v3 = vld [vmem:[%s1321_s1] sm:$0xff]  ;;  %v342_v4 = vld [vmem:[%s1321_s1 + $0x8] sm:$0xff]  ;;  %v343_v5 = vld [vmem:[%s1321_s1 + $0x10] sm:$0xff] }
  0x81   : > { %966 = vsyncadd (%p1341_p9), [#allocation9], 4294967280  ;;  %712 = vmatprep.subr.bf16.mxu0 %v987_v1  ;;  %690 = vmatprep.mubr.msk.f32.mxu0 %vm988_vm0, %v989_v2  ;;  %v713_v6 = vpack.c.bf16 %v342_v4, %v341_v3  ;;  %v344_v7 = vld [vmem:[%s1321_s1 + $0x18] sm:$0xff]  ;;  %v345_v9 = vld [vmem:[%s1321_s1 + $0x20] sm:$0xff]  ;;  %vm438_vm1 = vcmask 523264   ;;  %vm515_vm2 = vcmask 253952  }
  0x82   : > { %736 = vmatprep.subr.bf16.mxu1 %v987_v1  ;;  %709 = vmatprep.mubr.msk.f32.mxu1 %vm988_vm0, %v989_v2  ;;  %v716_v8 = vpack.c.bf16 %v344_v7, %v343_v5  ;;  %v346_v10 = vld [vmem:[%s1321_s1 + $0x28] sm:$0xff]  ;;  %v429_v12 = vld [vmem:[%s1323_s3] sm:$0xff]  ;;  %v431_v15 = vld [vmem:[%s1323_s3 + $0x10] sm:$0xff]  ;;  %p329_p8 = scmp.lt.s32.totalorder %s1052_s6, 1  ;;  %vm526_vm3 = vcmask 0  }
  0x83   : > { %714 = vmatpush3.bf16.msra.mxu0 %v713_v6  ;;  %v332_v11 = vld [vmem:[%s288_s17] sm:$0xff]  ;;  %v432_v16 = vld [vmem:[%s1323_s3 + $0x18] sm:$0xff]  ;;  %v719_v17 = vpack.c.bf16 %v346_v10, %v345_v9  ;;  %v357_v47 = vld [vmem:[#allocation5] sm:$0x1] }
  0x84   : > { %715 = vmatprep.subr.bf16.mxu0 %v987_v1  ;;  %v333_v13 = vrot.slane %v332_v11, 4  ;;  %v430_v14 = vld [vmem:[%s1323_s3 + $0x8] sm:$0xff]  ;;  %v347_v19 = vld [vmem:[%s1321_s1 + $0x30] sm:$0xff]  ;;  %v348_v20 = vld [vmem:[%s1321_s1 + $0x38] sm:$0xff]  ;;  %v740_v21 = vpack.c.bf16 %v432_v16, %v431_v15  ;;  %s1347_s6 = smov (!%p329_p8, %s1052_s6), 1 }
  0x85   : > { %v737_v18 = vpack.c.bf16 %v430_v14, %v429_v12  ;;  %v433_v23 = vld [vmem:[%s1323_s3 + $0x20] sm:$0xff]  ;;  %v434_v24 = vld [vmem:[%s1323_s3 + $0x28] sm:$0xff]  ;;  %v722_v25 = vpack.c.bf16 %v348_v20, %v347_v19  ;;  %v351_v31 = vld [vmem:[%s1321_s1 + $0x50] sm:$0xff]  ;;  %s331_s23 = scalar_lea.vmem %s1327_s7, %s1347_s6 }
  0x86   : > { %v334_v22 = vadd.f32 %v333_v13, %v332_v11  ;;  %v349_v26 = vld [vmem:[%s1321_s1 + $0x40] sm:$0xff]  ;;  %v350_v27 = vld [vmem:[%s1321_s1 + $0x48] sm:$0xff]  ;;  %v743_v28 = vpack.c.bf16 %v434_v24, %v433_v23  ;;  %v352_v32 = vld [vmem:[%s1321_s1 + $0x58] sm:$0xff] }
  0x87   : > { %717 = vmatpush3.bf16.msra.mxu0 %v716_v8  ;;  %738 = vmatpush3.bf16.msra.mxu1 %v737_v18  ;;  %v725_v30 = vpack.c.bf16 %v350_v27, %v349_v26  ;;  %v728_v34 = vpack.c.bf16 %v352_v32, %v351_v31  ;;  %v353_v35 = vld [vmem:[%s1321_s1 + $0x60] sm:$0xff]  ;;  %v354_v36 = vld [vmem:[%s1321_s1 + $0x68] sm:$0xff]  ;;  %v355_v39 = vld [vmem:[%s1321_s1 + $0x70] sm:$0xff] }
  0x88   : > { %718 = vmatprep.subr.bf16.mxu0 %v987_v1  ;;  %739 = vmatprep.subr.bf16.mxu1 %v987_v1  ;;  %v335_v29 = vrot.slane %v334_v22, 2  ;;  %v731_v38 = vpack.c.bf16 %v354_v36, %v353_v35  ;;  %v356_v40 = vld [vmem:[%s1321_s1 + $0x78] sm:$0xff]  ;;  %v435_v44 = vld [vmem:[%s1323_s3 + $0x30] sm:$0xff]  ;;  %v519_v60 = vld [vmem:[#allocation2] sm:$0x1] }
  0x89   : > { %v734_v42 = vpack.c.bf16 %v356_v40, %v355_v39  ;;  %v436_v45 = vld [vmem:[%s1323_s3 + $0x38] sm:$0xff]  ;;  %v437_v52 = vld [vmem:[#allocation7] sm:$0x1]  ;;  %v513_v56 = vld [vmem:[#allocation8] sm:$0x1] }
  0x8a   : > { %v336_v33 = vadd.f32 %v335_v29, %v334_v22  ;;  %v746_v46 = vpack.c.bf16 %v436_v45, %v435_v44 }
  0x8b   : > { %720 = vmatpush3.bf16.msra.mxu0 %v719_v17  ;;  %741 = vmatpush3.bf16.msra.mxu1 %v740_v21 }
  0x8c   : > { %721 = vmatprep.subr.bf16.mxu0 %v987_v1  ;;  %742 = vmatprep.subr.bf16.mxu1 %v987_v1  ;;  %v337_v37 = vrot.slane %v336_v33, 1 }
  0x8e   : > { %v338_v41 = vadd.f32 %v337_v37, %v336_v33 }
  0x8f   : > { %723 = vmatpush3.bf16.msra.mxu0 %v722_v25  ;;  %744 = vmatpush3.bf16.msra.mxu1 %v743_v28 }
  0x90   : > { %724 = vmatprep.subr.bf16.mxu0 %v987_v1  ;;  %745 = vmatprep.subr.bf16.mxu1 %v987_v1  ;;  %v340_v43 = vmul.f32 0.125, %v338_v41 }
  0x93   : > { %726 = vmatpush3.bf16.msra.mxu0 %v725_v30  ;;  %747 = vmatpush3.bf16.msra.mxu1 %v746_v46 }
  0x94   : > { %727 = vmatprep.subr.bf16.mxu0 %v987_v1 }
  0x97   : > { %729 = vmatpush3.bf16.msra.mxu0 %v728_v34 }
  0x98   : > { %730 = vmatprep.subr.bf16.mxu0 %v987_v1 }
  0x9b   : > { %732 = vmatpush3.bf16.msra.mxu0 %v731_v38 }
  0x9c   : > { %733 = vmatprep.subr.bf16.mxu0 %v987_v1 }
  0x9f   : > { %735 = vmatpush3.bf16.msra.mxu0 %v734_v42 }
  0xa2   : > { %691 = vmatmul.mubr.f32.vlgmr.msra.gmra.mrb[0].mxu0 %v340_v43 }
 0x175   : > { %v424_v48 = vpop.f32.mrb[0].mxu0 }
 0x176   : > { %v425_v49 = vadd.f32 %v424_v48, %v357_v47  ;;  %v692_v50 = vpop.f32.mrb[1].mxu0 }
 0x178   : > { %v428_v51 = vmax.f32 %v425_v49, 0.0 }
 0x17a   : > { %710 = vmatmul.mubr.msk.f32.vlgmr.msra.gmra.mrb[0].mxu1 %vm438_vm1, %v428_v51 }
 0x24d   : > { %v508_v53 = vpop.f32.mrb[0].mxu1 }
 0x24e   : > { %v509_v54 = vadd.f32 %v508_v53, %v437_v52  ;;  %v711_v55 = vpop.f32.mrb[1].mxu1 }
 0x250   : > { %v512_v57 = vmax.f32 %v509_v54, 0.0 }
 0x252   : > { %v514_v58 = vmul.f32 %v513_v56, %v512_v57 }
 0x254   : > { %v516_v59 = vsel %vm515_vm2, %v514_v58, 0.0 }
 0x255   : > { %517 = vadd.xlane.f32.xlu0 %v516_v59 }
 0x2e2   : > { %v518_v61 = vpop.xlane.xlu0 %517 }
 0x2e3   : > { %v520_v62 = vadd.f32 %v519_v60, %v518_v61 }
 0x2e5   : > { %v521_v63 = vsub.f32 0.0, %v520_v62 }
 0x2e7   : > { %v522_v0 = vmul.f32 1.442695, %v521_v63 }
 0x2e9   : > { %821 = vpow2.f32 %v522_v0 }
 0x2f3   : > { %v822_v1 = vpop.eup %821 }
 0x2f4   : > { %v524_v2 = vadd.f32 1.0, %v822_v1 }
 0x2f6   : > { %823 = vrcp.f32 %v524_v2 }
 0x300   : > { %v824_v3 = vpop.eup %823 }
 0x301   : > { %527 = vst.msk [vmem:[%s331_s23] sm:$0x1] %vm526_vm3, %v824_v3 }
 0x302 PF: > { %p21_p10 = scmp.ge.s32.totalorder %s1153_s21, 4   ;;  %s1342_s26 = smov %s973_s27 }
 0x303   : > { %s1343_s27 = smov %s977_s28  ;;  %s1344_s28 = smov %s1163_s22 }
 0x304   : > { %s1345_s29 = smov %s1153_s21  ;;  %23 = sbr.rel (!%p21_p10) target bundleno = 8 (0x8), region = 100 }
 0x30b   :  { %545 = vsyncpa [#allocation4], 1 }
 0x30c   :  { %547 = vsyncpa [#allocation4 + $0x1], 1 }
 0x30d   :  { %548 = vsyncpa [#allocation6], 1 }
 0x30e   :  { %549 = vsyncpa [#allocation9], 1 }

// kernel: fastvqa_forward.2
= control target key start
LH: loop header
LB: loop body
LE: loop exit
PB: predicated region body
PF: predicated region fallthrough
CT: control target
= control target key end

     0   :  { %s2834_s0 = inlined_call_operand.hbm [shape: bf16[128,768], index: 0, kind: input, shape index: {}]   ;;  %s2835_s1 = inlined_call_operand.hbm [shape: f32[768,128], index: 1, kind: input, shape index: {}]   ;;  %s2836_s2 = inlined_call_operand.hbm [shape: f32[1,128], index: 2, kind: input, shape index: {}]   ;;  %s2837_s3 = inlined_call_operand.hbm [shape: f32[128,32], index: 3, kind: input, shape index: {}]   ;;  %s2838_s4 = inlined_call_operand.hbm [shape: f32[1,32], index: 4, kind: input, shape index: {}]   ;;  %s2839_s5 = inlined_call_operand.hbm [shape: f32[1,32], index: 5, kind: input, shape index: {}]   ;;  %s2840_s6 = inlined_call_operand.<no memory space> [shape: f32[1,1], index: 6, kind: input, shape index: {}]   ;;  %s2841_s7 = inlined_call_operand.hbm [shape: f32[16,128], index: 7, kind: output, shape index: {}]  }
   0x1   :  { %2847 = sst [smem:[#allocation21_spill]] %s2835_s1  ;;  %v12_v0 = vstv %s2840_s6 }
   0x2   :  { %2848 = sst [smem:[#allocation22_spill]] %s2836_s2  ;;  %13 = vst [vmem:[#allocation3] sm:$0x1] %v12_v0 }
   0x3   :  { %14 = vsyncpa [#allocation5], 0 }
   0x4   :  { %16 = vsyncpa [#allocation5 + $0x1], 0 }
   0x5   :  { %17 = vsyncpa [#allocation8], 0 }
   0x6   :  { %18 = vsyncpa [#allocation11], 0 }
   0x7   :  { %19 = vsyncpa [#allocation14], 0 }
   0x8   :  { %20 = vsyncpa [#allocation6], 0 }
   0x9   :  { %22 = vsyncpa [#allocation6 + $0x1], 0  ;;  %s2415_s26 = smov 0   ;;  %s2417_s27 = smov 0  }
   0xa   :  { %s2419_s28 = smov 0   ;;  %s2421_s29 = smov 0  }
   0xb   :  { %s2423_s30 = smov 0   ;;  %s2425_s8 = smov 0  }
   0xc LB: > { %s2842_s6 = sadd.s32 4294967295, %s2358_s8   ;;  %p1550_p0 = scmp.ge.s32.totalorder %s2358_s8, 1  ;;  %s2358_s8 = sphi %s2425_s8, %s28_s8   ;;  %s2354_s30 = sphi %s2423_s30, %s2871_s30   ;;  %s2350_s29 = sphi %s2421_s29, %s2870_s29   ;;  %s2346_s28 = sphi %s2419_s28, %s2869_s28   ;;  %s2342_s27 = sphi %s2417_s27, %s2868_s27   ;;  %s2338_s26 = sphi %s2415_s26, %s2867_s26  }
   0xd   : > { %p2449_p1 = scmp.eq.s32.totalorder %s2842_s6, 0  ;;  %p230_p2 = scmp.lt.s32.totalorder %s2358_s8, 3 }
   0xe   : > { %s2360_s11 = smov [#allocation7]   ;;  %s2361_s14 = smov [#allocation10]  }
   0xf   : > { %s2849_s9 = scalar_select %p2449_p1, 1, 0 }
  0x10   : > { %p2454_p3 = pnand %p1550_p0, %p230_p2  ;;  %s245_s12 = sshll.u32 %s2360_s11, 4  ;;  %s2458_s12 = int_to_ptr.vmem [resolvable:$true] %s245_s12 }
  0x11   : > { %s269_s15 = sshll.u32 %s2361_s14, 4  ;;  %s2362_s16 = smov [#allocation9]   ;;  %s2469_s15 = int_to_ptr.vmem [resolvable:$true] %s269_s15 }
  0x12   : > { %s2850_s10 = scalar_select %p2454_p3, 1, 0 }
  0x13   : > { %p1966_p4 = pneg %p2454_p3  ;;  %s2471_s17 = sshll.u32 %s2362_s16, 4  ;;  %s260_s17 = int_to_ptr.vmem [resolvable:$true] %s2471_s17 }
  0x14   : > { %s2852_s1 = sld [smem:[#allocation21_spill]] }
  0x15   : > { %p2465_p6 = pnand %p1966_p4, %p2449_p1 }
  0x17   : > { %p2481_p8 = pneg %p2465_p6 }
  0x1a   : > { %s2094_s20 = scalar_lea.hbm %s2852_s1, 12288 }
  0x1b   : > { %p2095_p7 = scmp.ne.s32.totalorder %s2852_s1, %s2094_s20  ;;  %p2101_p11 = scmp.lt.u32.totalorder %s2094_s20, %s2852_s1 }
  0x1d   : > { %p2097_p9 = pnand %p2481_p8, %p2095_p7 }
  0x1f   : > { %p2098_p10 = pneg %p2097_p9 }
  0x21   : > { %p2103_p12 = pnand %p2101_p11, %p2098_p10 }
  0x23   : > { %2106 = shalt.err (!%p2103_p12)
}
  0x24   : > { %s2107_s11 = scalar_lea.vmem %s2458_s12, 12288  ;;  %p2115_p4 = scmp.lt.s32.totalorder %s2458_s12, %s2458_s12 }
  0x25   : > { %p2108_p13 = scmp.ne.s32.totalorder %s2458_s12, %s2107_s11  ;;  %p2116_p5 = scmp.lt.s32.totalorder %s2107_s11, %s2107_s11 }
  0x27   : > { %p2110_p0 = pnand %p2108_p13, %p2481_p8  ;;  %p2117_p7 = por %p2116_p5, %p2115_p4 }
  0x29   : > { %p2111_p2 = pneg %p2110_p0 }
  0x2b   : > { %p2118_p9 = pnand %p2117_p7, %p2111_p2 }
  0x2d   : > { %2121 = shalt.err (!%p2118_p9)
}
  0x2e   : > { %s2363_s14 = smov 128   ;;  %s2364_s16 = smov 8  }
  0x2f   : > { %1969 = dma.hbm_to_vmem [thread:$0]  (!%p2465_p6), %s2852_s1, 12288, %s2458_s12, [#allocation8], %s2363_s14, %s2363_s14, %s2364_s16  }
  0x30   : > { %s2122_s22 = scalar_lea.hbm %s2837_s3, 2048 }
  0x31   : > { %p2123_p5 = scmp.ne.s32.totalorder %s2837_s3, %s2122_s22  ;;  %p2129_p12 = scmp.lt.u32.totalorder %s2122_s22, %s2837_s3 }
  0x33   : > { %p2125_p10 = pnand %p2123_p5, %p2481_p8 }
  0x35   : > { %p2126_p11 = pneg %p2125_p10 }
  0x37   : > { %p2131_p13 = pnand %p2129_p12, %p2126_p11 }
  0x39   : > { %2134 = shalt.err (!%p2131_p13)
}
  0x3a   : > { %s2135_s12 = scalar_lea.vmem %s2469_s15, 2048  ;;  %p2143_p7 = scmp.lt.s32.totalorder %s2469_s15, %s2469_s15 }
  0x3b   : > { %p2136_p0 = scmp.ne.s32.totalorder %s2469_s15, %s2135_s12  ;;  %p2144_p9 = scmp.lt.s32.totalorder %s2135_s12, %s2135_s12 }
  0x3d   : > { %p2138_p2 = pnand %p2136_p0, %p2481_p8  ;;  %p2145_p5 = por %p2144_p9, %p2143_p7 }
  0x3f   : > { %p2139_p4 = pneg %p2138_p2 }
  0x41   : > { %p2146_p10 = pnand %p2145_p5, %p2139_p4 }
  0x43   : > { %2149 = shalt.err (!%p2146_p10)
}
  0x44   : > { %1975 = dma.hbm_to_vmem [thread:$0]  (!%p2465_p6), %s2837_s3, 2048, %s2469_s15, [#allocation11], %s2363_s14, %s2363_s14, %s2364_s16  }
  0x45   : > { %s2854_s2 = sld [smem:[#allocation22_spill]] }
  0x4b   : > { %s2150_s21 = scalar_lea.hbm %s2854_s2, 16 }
  0x4c   : > { %p2151_p11 = scmp.ne.s32.totalorder %s2854_s2, %s2150_s21  ;;  %p2157_p0 = scmp.lt.u32.totalorder %s2150_s21, %s2854_s2 }
  0x4e   : > { %p2153_p12 = pnand %p2151_p11, %p2481_p8 }
  0x50   : > { %p2154_p13 = pneg %p2153_p12 }
  0x52   : > { %p2159_p2 = pnand %p2157_p0, %p2154_p13 }
  0x54   : > { %2162 = shalt.err (!%p2159_p2)
}
  0x55   : > { %s2163_s12 = scalar_lea.vmem %s260_s17, 16  ;;  %s2170_s15 = scalar_lea.vmem %s260_s17, 32 }
  0x56   : > { %p2164_p4 = scmp.ne.s32.totalorder %s260_s17, %s2163_s12  ;;  %p2171_p5 = scmp.lt.s32.totalorder %s260_s17, %s260_s17 }
  0x57   : > { %p2172_p10 = scmp.lt.s32.totalorder %s2170_s15, %s2163_s12 }
  0x58   : > { %p2166_p7 = pnand %p2164_p4, %p2481_p8 }
  0x59   : > { %p2173_p3 = por %p2172_p10, %p2171_p5 }
  0x5a   : > { %p2167_p9 = pneg %p2166_p7 }
  0x5c   : > { %p2174_p1 = pnand %p2173_p3, %p2167_p9 }
  0x5e   : > { %2177 = shalt.err (!%p2174_p1)
}
  0x5f   : > { %1972 = dma.hbm_to_vmem [thread:$0]  (!%p2465_p6), %s2854_s2, 16, %s260_s17, [#allocation8]  }
  0x60   : > { %s2365_s6 = smov [#allocation12]   ;;  %s2366_s19 = smov [#allocation13]  }
  0x61   : > { %s283_s18 = sshll.u32 %s2365_s6, 4  ;;  %s294_s20 = sshll.u32 %s2366_s19, 4  ;;  %s284_s18 = int_to_ptr.vmem [resolvable:$true] %s283_s18  ;;  %s295_s20 = int_to_ptr.vmem [resolvable:$true] %s294_s20 }
  0x62   : > { %s2178_s24 = scalar_lea.hbm %s2838_s4, 16 }
  0x63   : > { %p2179_p1 = scmp.ne.s32.totalorder %s2838_s4, %s2178_s24  ;;  %p2185_p12 = scmp.lt.u32.totalorder %s2178_s24, %s2838_s4 }
  0x65   : > { %p2181_p3 = pnand %p2179_p1, %p2481_p8 }
  0x67   : > { %p2182_p11 = pneg %p2181_p3 }
  0x69   : > { %p2187_p13 = pnand %p2185_p12, %p2182_p11 }
  0x6b   : > { %2190 = shalt.err (!%p2187_p13)
}
  0x6c   : > { %s2191_s17 = scalar_lea.vmem %s284_s18, 16  ;;  %s2198_s14 = scalar_lea.vmem %s284_s18, 32 }
  0x6d   : > { %p2192_p0 = scmp.ne.s32.totalorder %s284_s18, %s2191_s17  ;;  %p2199_p7 = scmp.lt.s32.totalorder %s284_s18, %s284_s18 }
  0x6e   : > { %p2200_p9 = scmp.lt.s32.totalorder %s2198_s14, %s2191_s17 }
  0x6f   : > { %p2194_p2 = pnand %p2192_p0, %p2481_p8 }
  0x70   : > { %p2201_p5 = por %p2200_p9, %p2199_p7 }
  0x71   : > { %p2195_p4 = pneg %p2194_p2 }
  0x73   : > { %p2202_p10 = pnand %p2201_p5, %p2195_p4 }
  0x75   : > { %2205 = shalt.err (!%p2202_p10)
}
  0x76   : > { %1978 = dma.hbm_to_vmem [thread:$0]  (!%p2465_p6), %s2838_s4, 16, %s284_s18, [#allocation11]  }
  0x77   : > { %s2206_s22 = scalar_lea.hbm %s2839_s5, 16 }
  0x78   : > { %p2207_p1 = scmp.ne.s32.totalorder %s2839_s5, %s2206_s22  ;;  %p2213_p12 = scmp.lt.u32.totalorder %s2206_s22, %s2839_s5 }
  0x7a   : > { %p2209_p3 = pnand %p2207_p1, %p2481_p8 }
  0x7c   : > { %p2210_p11 = pneg %p2209_p3 }
  0x7e   : > { %p2215_p13 = pnand %p2213_p12, %p2210_p11 }
  0x80   : > { %2218 = shalt.err (!%p2215_p13)
}
  0x81   : > { %s2219_s15 = scalar_lea.vmem %s295_s20, 16  ;;  %s2226_s18 = scalar_lea.vmem %s295_s20, 32 }
  0x82   : > { %p2220_p0 = scmp.ne.s32.totalorder %s295_s20, %s2219_s15  ;;  %p2227_p7 = scmp.lt.s32.totalorder %s295_s20, %s295_s20 }
  0x83   : > { %p2228_p9 = scmp.lt.s32.totalorder %s2226_s18, %s2219_s15 }
  0x84   : > { %p2222_p2 = pnand %p2220_p0, %p2481_p8 }
  0x85   : > { %p2229_p5 = por %p2228_p9, %p2227_p7 }
  0x86   : > { %p2223_p4 = pneg %p2222_p2 }
  0x88   : > { %p2230_p10 = pnand %p2229_p5, %p2223_p4 }
  0x8a   : > { %2233 = shalt.err (!%p2230_p10)
}
  0x8b   : > { %1981 = dma.hbm_to_vmem [thread:$0]  (!%p2465_p6), %s2839_s5, 16, %s295_s20, [#allocation14]  }
  0x8c   : > { %s1549_s23 = sadd.s32 4294967294, %s2358_s8   ;;  %s40_s16 = sadd.s32 1, %s2354_s30 }
  0x8d   : > { %s49_s13 = sadd.s32 1, %s2346_s28  ;;  %p42_p8 = scmp.ge.s32.totalorder %s40_s16, 2 }
  0x8e   : > { %p56_p1 = scmp.ne.s32.totalorder %s2346_s28, %s2342_s27  ;;  %p57_p3 = scmp.eq.s32.totalorder %s2358_s8, 0 }
  0x8f   : > { %p62_p11 = scmp.ne.s32.totalorder %s2342_s27, %s2338_s26  ;;  %s2873_s16 = smov (%p42_p8, %s40_s16), 0 }
  0x90   : > { %p2590_p12 = por %p57_p3, %p56_p1  ;;  %p2856_p13 = scmp.ne.s32.totalorder %s2849_s9, 0 }
  0x91   : > { %s44_s19 = ssub.s32 %s2354_s30, %s2873_s16  ;;  %s2858_s21 = sadd.s32 4294967295, %s2358_s8  }
  0x92   : > { %p2596_p6 = por %p2856_p13, %p62_p11  ;;  %p217_p0 = scmp.eq.s32.totalorder %s2858_s21, 1 }
  0x93   : > { %p47_p2 = scmp.eq.s32.totalorder %s44_s19, 0  ;;  %p223_p4 = scmp.eq.s32.totalorder %s1549_s23, 1 }
  0x94   : > { %p2604_p7 = por %p217_p0, %p56_p1  ;;  %p1995_p9 = scmp.lt.s32.totalorder %s2358_s8, 2 }
  0x95   : > { %s2610_s24 = scalar_select %p47_p2, %s2346_s28, %s49_s13  }
  0x96   : > { %s2859_s22 = scalar_select %p2604_p7, 1, 0 }
  0x97   : > { %p2612_p5 = por %p223_p4, %p62_p11  ;;  %s308_s11 = sand.u32 1, %s2346_s28  }
  0x98   : > { %s1939_s12 = smul.u32 192, %s308_s11  ;;  %p2620_p10 = pnand %p1995_p9, %p2590_p12 }
  0x99   : > { %s2860_s25 = scalar_select %p2612_p5, 1, 0 }
  0x9a   : > { %s1940_s15 = smul.u32 3072, %s2354_s30  ;;  %s312_s13 = scalar_lea.vmem [#allocation4], %s1939_s12 }
  0x9b   : > { %s322_s19 = sshll.u32 %s312_s13, 4  ;;  %s2631_s6 = scalar_lea.sflag [#allocation5], %s308_s11  ;;  %s2629_s19 = int_to_ptr.vmem [resolvable:$true] %s322_s19 }
  0x9c   : > { %s2627_s23 = scalar_lea.hbm %s2834_s0, %s1940_s15  ;;  %p2236_p1 = pneg %p2620_p10 }
  0x9d   : > { %s2234_s21 = scalar_lea.hbm %s2627_s23, 3072  ;;  %s2239_s14 = scalar_lea.hbm %s2834_s0, 6144 }
  0x9e   : > { %p2235_p8 = scmp.ne.s32.totalorder %s2627_s23, %s2234_s21  ;;  %p2240_p12 = scmp.lt.u32.totalorder %s2627_s23, %s2834_s0 }
  0x9f   : > { %p2241_p13 = scmp.lt.u32.totalorder %s2239_s14, %s2234_s21  ;;  %p2243_p2 = scmp.lt.u32.totalorder %s2234_s21, %s2627_s23 }
  0xa0   : > { %p2237_p3 = pnand %p2236_p1, %p2235_p8 }
  0xa1   : > { %p2242_p0 = por %p2241_p13, %p2240_p12 }
  0xa2   : > { %p2238_p11 = pneg %p2237_p3 }
  0xa3   : > { %p2244_p4 = por %p2243_p2, %p2242_p0 }
  0xa5   : > { %p2245_p9 = pnand %p2244_p4, %p2238_p11 }
  0xa7   : > { %2248 = shalt.err (!%p2245_p9)
}
  0xa8   : > { %s2249_s11 = scalar_lea.vmem %s2629_s19, 3072  ;;  %s2367_s12 = smov [#allocation4]  }
  0xa9   : > { %p2250_p8 = scmp.ne.s32.totalorder %s2629_s19, %s2249_s11  ;;  %s2254_s13 = sshll.u32 %s2367_s12, 4  ;;  %s2255_s13 = int_to_ptr.vmem [resolvable:$false] %s2254_s13 }
  0xaa   : > { %s2256_s1 = scalar_lea.vmem %s2255_s13, 6144  ;;  %p2257_p7 = scmp.lt.s32.totalorder %s2629_s19, %s2255_s13 }
  0xab   : > { %p2252_p3 = pnand %p2250_p8, %p2236_p1  ;;  %p2258_p12 = scmp.lt.s32.totalorder %s2256_s1, %s2249_s11 }
  0xad   : > { %p2253_p5 = pneg %p2252_p3  ;;  %p2259_p13 = por %p2258_p12, %p2257_p7 }
  0xaf   : > { %p2260_p0 = pnand %p2259_p13, %p2253_p5 }
  0xb1   : > { %2263 = shalt.err (!%p2260_p0)
}
  0xb2   : > { %s2368_s2 = smov 384   ;;  %s2369_s21 = smov 24  }
  0xb3   : > { %1985 = dma.hbm_to_vmem [thread:$0]  (!%p2620_p10), %s2627_s23, 3072, %s2629_s19, %s2631_s6, %s2368_s2, %s2368_s2, %s2369_s21  }
  0xb4   : > { %p2862_p1 = scmp.ne.s32.totalorder %s2850_s10, 0 }
  0xb5   : > { %s2662_s15 = sand.u32 (!%p2862_p1), 1, %s2342_s27  }
  0xb6   : > { %334 = sbr.rel (%p2862_p1) target bundleno = 1093 (0x445), region = 48  ;;  %s337_s14 = scalar_lea.sflag (!%p2862_p1), [#allocation5], %s2662_s15 }
  0xb7   : > { %s1941_s17 = smul.u32 (!%p2862_p1), 192, %s2662_s15 }
  0xb9   : > { %s2666_s11 = scalar_lea.vmem (!%p2862_p1), [#allocation4], %s1941_s17 }
  0xbd   : > { %2317 = dma.done.wait (%p2596_p6), %s337_s14, 3072  }
  0xbe   : > { %2319 = vsyncadd (%p2596_p6), %s337_s14, 4294964224  ;;  %p2863_p7 = scmp.ne.s32.totalorder %s2849_s9, 0 }
  0xc0   : > { %2321 = dma.done.wait (%p2863_p7), [#allocation8], 12304  }
  0xc1   : > { %2323 = vsyncadd (%p2863_p7), [#allocation8], 4294954992 }
  0xc2   : > { %2325 = dma.done.wait (%p2863_p7), [#allocation11], 2064  }
  0xc3   : > { %2327 = vsyncadd (%p2863_p7), [#allocation11], 4294965232 }
  0xc4   : > { %2329 = dma.done.wait (%p2863_p7), [#allocation14], 16  }
  0xc5   : > { %2331 = vsyncadd (%p2863_p7), [#allocation14], 4294967280  ;;  %v502_v1 = vld [vmem:[#allocation7 + $0x80] sm:$0xff]  ;;  %v503_v2 = vld [vmem:[#allocation7 + $0x88] sm:$0xff]  ;;  %vm1090_vm0 = vcmask 261120   ;;  %vm1130_vm1 = vcmask 7168  }
  0xc6   : > { %v534_v3 = vld [vmem:[#allocation7 + $0x180] sm:$0xff]  ;;  %v1811_v4 = vpack.c.bf16 %v503_v2, %v502_v1  ;;  %v535_v5 = vld [vmem:[#allocation7 + $0x188] sm:$0xff]  ;;  %v504_v12 = vld [vmem:[#allocation7 + $0x90] sm:$0xff]  ;;  %vm1387_vm2 = vcmask 1041409   ;;  %vm1389_vm3 = vcmask 1042434   ;;  %s1566_s9 = sshll.u32 %s2662_s15, 3 }
  0xc7   : > { %v486_v6 = vld [vmem:[#allocation7] sm:$0xff]  ;;  %v487_v7 = vld [vmem:[#allocation7 + $0x8] sm:$0xff]  ;;  %v1843_v8 = vpack.c.bf16 %v535_v5, %v534_v3  ;;  %v505_v14 = vld [vmem:[#allocation7 + $0x98] sm:$0xff]  ;;  %vm1391_vm4 = vcmask 1043459   ;;  %vm1393_vm5 = vcmask 1044484   ;;  %vm1395_vm6 = vcmask 1045509  }
  0xc8   : > { %v1813_v9 = vpack.c.bf16 %v487_v7, %v486_v6  ;;  %v518_v10 = vld [vmem:[#allocation7 + $0x100] sm:$0xff]  ;;  %v519_v11 = vld [vmem:[#allocation7 + $0x108] sm:$0xff]  ;;  %1812 = vmatprep.subr.bf16.mxu0 %v1811_v4  ;;  %v536_v15 = vld [vmem:[#allocation7 + $0x190] sm:$0xff]  ;;  %v1815_v17 = vpack.c.bf16 %v505_v14, %v504_v12  ;;  %vm1397_vm7 = vcmask 1046534   ;;  %s1572_s10 = sshll.u32 %s2350_s29, 7  ;;  %s390_s20 = scalar_lea.vmem [#allocation15], %s1566_s9 }
  0xc9   : > { %v1845_v13 = vpack.c.bf16 %v519_v11, %v518_v10  ;;  %v537_v16 = vld [vmem:[#allocation7 + $0x198] sm:$0xff]  ;;  %1844 = vmatprep.subr.bf16.mxu1 %v1843_v8  ;;  %v488_v19 = vld [vmem:[#allocation7 + $0x10] sm:$0xff]  ;;  %v506_v24 = vld [vmem:[#allocation7 + $0xa0] sm:$0xff]  ;;  %s1417_s18 = sshll.u32 %s390_s20, 4  ;;  %vm1399_vm8 = vcmask 1047559   ;;  %s2785_s6 = scalar_lea.hbm %s2841_s7, %s1572_s10  ;;  %s2787_s18 = int_to_ptr.vmem [resolvable:$true] %s1417_s18 }
  0xca   : > { %1814 = vmatpush3.bf16.msra.mxu0 %v1813_v9  ;;  %v1847_v18 = vpack.c.bf16 %v537_v16, %v536_v15  ;;  %v489_v20 = vld [vmem:[#allocation7 + $0x18] sm:$0xff]  ;;  %v520_v21 = vld [vmem:[#allocation7 + $0x110] sm:$0xff]  ;;  %v507_v25 = vld [vmem:[#allocation7 + $0xa8] sm:$0xff]  ;;  %s1404_s12 = scalar_lea.sflag [#allocation6], %s2662_s15  ;;  %s2264_s29 = scalar_lea.vmem %s2787_s18, 128 }
  0xcb   : > { %1846 = vmatpush3.bf16.msra.mxu1 %v1845_v13  ;;  %v1817_v22 = vpack.c.bf16 %v489_v20, %v488_v19  ;;  %v521_v23 = vld [vmem:[#allocation7 + $0x118] sm:$0xff]  ;;  %1816 = vmatprep.subr.bf16.mxu0 %v1815_v17  ;;  %v1819_v27 = vpack.c.bf16 %v507_v25, %v506_v24  ;;  %v538_v28 = vld [vmem:[#allocation7 + $0x1a0] sm:$0xff]  ;;  %v539_v29 = vld [vmem:[#allocation7 + $0x1a8] sm:$0xff]  ;;  %p2265_p6 = scmp.ne.s32.totalorder %s2787_s18, %s2264_s29  ;;  %p2864_p5 = scmp.ne.s32.totalorder %s2859_s22, 0 }
  0xcc   : > { %1848 = vmatprep.subr.bf16.mxu1 %v1847_v18  ;;  %v1849_v26 = vpack.c.bf16 %v521_v23, %v520_v21  ;;  %v490_v30 = vld [vmem:[#allocation7 + $0x20] sm:$0xff]  ;;  %v1851_v31 = vpack.c.bf16 %v539_v29, %v538_v28  ;;  %v491_v32 = vld [vmem:[#allocation7 + $0x28] sm:$0xff]  ;;  %v508_v36 = vld [vmem:[#allocation7 + $0xb0] sm:$0xff]  ;;  %s2371_s13 = smov [#allocation15]  }
  0xcd   : > { %v522_v33 = vld [vmem:[#allocation7 + $0x120] sm:$0xff]  ;;  %v523_v34 = vld [vmem:[#allocation7 + $0x128] sm:$0xff]  ;;  %v1821_v35 = vpack.c.bf16 %v491_v32, %v490_v30  ;;  %v509_v37 = vld [vmem:[#allocation7 + $0xb8] sm:$0xff]  ;;  %p2266_p10 = pnand %p2265_p6, %p2864_p5  ;;  %s2268_s1 = sshll.u32 %s2371_s13, 4  ;;  %s2269_s1 = int_to_ptr.vmem [resolvable:$false] %s2268_s1 }
  0xce   : > { %1818 = vmatpush3.bf16.msra.mxu0 %v1817_v22  ;;  %v540_v38 = vld [vmem:[#allocation7 + $0x1b0] sm:$0xff]  ;;  %v1853_v39 = vpack.c.bf16 %v523_v34, %v522_v33  ;;  %v1823_v40 = vpack.c.bf16 %v509_v37, %v508_v36  ;;  %v541_v41 = vld [vmem:[#allocation7 + $0x1b8] sm:$0xff]  ;;  %v510_v47 = vld [vmem:[#allocation7 + $0xc0] sm:$0xff]  ;;  %s2270_s2 = scalar_lea.vmem %s2269_s1, 256  ;;  %p2271_p2 = scmp.lt.s32.totalorder %s2787_s18, %s2269_s1 }
  0xcf   : > { %1850 = vmatpush3.bf16.msra.mxu1 %v1849_v26  ;;  %1820 = vmatprep.subr.bf16.mxu0 %v1819_v27  ;;  %v492_v42 = vld [vmem:[#allocation7 + $0x30] sm:$0xff]  ;;  %v493_v43 = vld [vmem:[#allocation7 + $0x38] sm:$0xff]  ;;  %v1855_v44 = vpack.c.bf16 %v541_v41, %v540_v38  ;;  %v511_v48 = vld [vmem:[#allocation7 + $0xc8] sm:$0xff]  ;;  %p2267_p11 = pneg %p2266_p10  ;;  %p2272_p4 = scmp.lt.s32.totalorder %s2270_s2, %s2264_s29 }
  0xd0   : > { %1852 = vmatprep.subr.bf16.mxu1 %v1851_v31  ;;  %v524_v45 = vld [vmem:[#allocation7 + $0x130] sm:$0xff]  ;;  %v525_v46 = vld [vmem:[#allocation7 + $0x138] sm:$0xff]  ;;  %v542_v49 = vld [vmem:[#allocation7 + $0x1c0] sm:$0xff]  ;;  %v1825_v51 = vpack.c.bf16 %v493_v43, %v492_v42  ;;  %v1827_v53 = vpack.c.bf16 %v511_v48, %v510_v47 }
  0xd1   : > { %v543_v50 = vld [vmem:[#allocation7 + $0x1c8] sm:$0xff]  ;;  %v1857_v52 = vpack.c.bf16 %v525_v46, %v524_v45  ;;  %v494_v54 = vld [vmem:[#allocation7 + $0x40] sm:$0xff]  ;;  %v512_v59 = vld [vmem:[#allocation7 + $0xd0] sm:$0xff]  ;;  %p2273_p9 = por %p2272_p4, %p2271_p2 }
  0xd2   : > { %1822 = vmatpush3.bf16.msra.mxu0 %v1821_v35  ;;  %v495_v55 = vld [vmem:[#allocation7 + $0x48] sm:$0xff]  ;;  %v526_v56 = vld [vmem:[#allocation7 + $0x140] sm:$0xff]  ;;  %v1859_v57 = vpack.c.bf16 %v543_v50, %v542_v49  ;;  %v513_v60 = vld [vmem:[#allocation7 + $0xd8] sm:$0xff] }
  0xd3   : > { %1854 = vmatpush3.bf16.msra.mxu1 %v1853_v39  ;;  %1824 = vmatprep.subr.bf16.mxu0 %v1823_v40  ;;  %v527_v58 = vld [vmem:[#allocation7 + $0x148] sm:$0xff]  ;;  %v544_v61 = vld [vmem:[#allocation7 + $0x1d0] sm:$0xff]  ;;  %v545_v62 = vld [vmem:[#allocation7 + $0x1d8] sm:$0xff]  ;;  %v1829_v63 = vpack.c.bf16 %v495_v55, %v494_v54  ;;  %v1831_v1 = vpack.c.bf16 %v513_v60, %v512_v59  ;;  %p2274_p8 = pnand %p2273_p9, %p2267_p11 }
  0xd4   : > { %1856 = vmatprep.subr.bf16.mxu1 %v1855_v44  ;;  %v1861_v0 = vpack.c.bf16 %v527_v58, %v526_v56  ;;  %v496_v2 = vld [vmem:[#allocation7 + $0x50] sm:$0xff]  ;;  %v497_v3 = vld [vmem:[#allocation7 + $0x58] sm:$0xff]  ;;  %v1863_v5 = vpack.c.bf16 %v545_v62, %v544_v61  ;;  %v514_v7 = vld [vmem:[#allocation7 + $0xe0] sm:$0xff] }
  0xd5   : > { %v528_v4 = vld [vmem:[#allocation7 + $0x150] sm:$0xff]  ;;  %v529_v6 = vld [vmem:[#allocation7 + $0x158] sm:$0xff]  ;;  %v515_v8 = vld [vmem:[#allocation7 + $0xe8] sm:$0xff]  ;;  %v1833_v11 = vpack.c.bf16 %v497_v3, %v496_v2 }
  0xd6   : > { %1826 = vmatpush3.bf16.msra.mxu0 %v1825_v51  ;;  %v546_v9 = vld [vmem:[#allocation7 + $0x1e0] sm:$0xff]  ;;  %v547_v10 = vld [vmem:[#allocation7 + $0x1e8] sm:$0xff]  ;;  %v1865_v14 = vpack.c.bf16 %v529_v6, %v528_v4  ;;  %v1835_v15 = vpack.c.bf16 %v515_v8, %v514_v7  ;;  %v516_v21 = vld [vmem:[#allocation7 + $0xf0] sm:$0xff] }
  0xd7   : > { %1858 = vmatpush3.bf16.msra.mxu1 %v1857_v52  ;;  %1828 = vmatprep.subr.bf16.mxu0 %v1827_v53  ;;  %v498_v12 = vld [vmem:[#allocation7 + $0x60] sm:$0xff]  ;;  %v499_v13 = vld [vmem:[#allocation7 + $0x68] sm:$0xff]  ;;  %v1867_v19 = vpack.c.bf16 %v547_v10, %v546_v9  ;;  %v517_v22 = vld [vmem:[#allocation7 + $0xf8] sm:$0xff] }
  0xd8   : > { %1860 = vmatprep.subr.bf16.mxu1 %v1859_v57  ;;  %v530_v16 = vld [vmem:[#allocation7 + $0x160] sm:$0xff]  ;;  %v415_v18 = vld [vmem:[%s2666_s11 + $0x8] sm:$0xff]  ;;  %v548_v24 = vld [vmem:[#allocation7 + $0x1f0] sm:$0xff]  ;;  %v1837_v27 = vpack.c.bf16 %v499_v13, %v498_v12  ;;  %v1839_v29 = vpack.c.bf16 %v517_v22, %v516_v21 }
  0xd9   : > { %v414_v17 = vld [vmem:[%s2666_s11] sm:$0xff]  ;;  %v531_v20 = vld [vmem:[#allocation7 + $0x168] sm:$0xff]  ;;  %v549_v25 = vld [vmem:[#allocation7 + $0x1f8] sm:$0xff]  ;;  %v441_v26 = vunpack.c.h.bf16 %v415_v18  ;;  %v440_v47 = vunpack.c.l.bf16 %v415_v18 }
  0xda   : > { %1830 = vmatpush3.bf16.msra.mxu0 %v1829_v63  ;;  %v439_v23 = vunpack.c.h.bf16 %v414_v17  ;;  %v1869_v28 = vpack.c.bf16 %v531_v20, %v530_v16  ;;  %v500_v30 = vld [vmem:[#allocation7 + $0x70] sm:$0xff]  ;;  %v501_v31 = vld [vmem:[#allocation7 + $0x78] sm:$0xff]  ;;  %v1871_v33 = vpack.c.bf16 %v549_v25, %v548_v24  ;;  %v566_v35 = vld [vmem:[#allocation7 + $0x280] sm:$0xff]  ;;  %v438_v44 = vunpack.c.l.bf16 %v414_v17 }
  0xdb   : > { %1862 = vmatpush3.bf16.msra.mxu1 %v1861_v0  ;;  %1832 = vmatprep.subr.bf16.mxu0 %v1831_v1  ;;  %v532_v32 = vld [vmem:[#allocation7 + $0x170] sm:$0xff]  ;;  %v533_v34 = vld [vmem:[#allocation7 + $0x178] sm:$0xff]  ;;  %v567_v36 = vld [vmem:[#allocation7 + $0x288] sm:$0xff]  ;;  %v1841_v37 = vpack.c.bf16 %v501_v31, %v500_v30 }
  0xdc   : > { %1864 = vmatprep.subr.bf16.mxu1 %v1863_v5  ;;  %646 = vmatprep.mubr.f32.mxu0 %v439_v23  ;;  %v1873_v38 = vpack.c.bf16 %v533_v34, %v532_v32  ;;  %v1875_v39 = vpack.c.bf16 %v567_v36, %v566_v35  ;;  %v550_v40 = vld [vmem:[#allocation7 + $0x200] sm:$0xff]  ;;  %v551_v41 = vld [vmem:[#allocation7 + $0x208] sm:$0xff]  ;;  %v417_v42 = vld [vmem:[%s2666_s11 + $0x18] sm:$0xff] }
  0xdd   : > { %751 = vmatprep.mubr.f32.mxu1 %v441_v26  ;;  %v418_v43 = vld [vmem:[%s2666_s11 + $0x20] sm:$0xff]  ;;  %v568_v45 = vld [vmem:[#allocation7 + $0x290] sm:$0xff]  ;;  %v569_v46 = vld [vmem:[#allocation7 + $0x298] sm:$0xff]  ;;  %v1877_v48 = vpack.c.bf16 %v551_v41, %v550_v40  ;;  %v445_v49 = vunpack.c.h.bf16 %v417_v42  ;;  %v444_v56 = vunpack.c.l.bf16 %v417_v42 }
  0xde   : > { %1834 = vmatpush3.bf16.msra.mxu0 %v1833_v11  ;;  %v447_v50 = vunpack.c.h.bf16 %v418_v43  ;;  %v552_v51 = vld [vmem:[#allocation7 + $0x210] sm:$0xff]  ;;  %v553_v52 = vld [vmem:[#allocation7 + $0x218] sm:$0xff]  ;;  %v1879_v53 = vpack.c.bf16 %v569_v46, %v568_v45  ;;  %v570_v57 = vld [vmem:[#allocation7 + $0x2a0] sm:$0xff]  ;;  %v446_v59 = vunpack.c.l.bf16 %v418_v43 }
  0xdf   : > { %1866 = vmatpush3.bf16.msra.mxu1 %v1865_v14  ;;  %1836 = vmatprep.subr.bf16.mxu0 %v1835_v15  ;;  %v420_v54 = vld [vmem:[%s2666_s11 + $0x30] sm:$0xff]  ;;  %v421_v55 = vld [vmem:[%s2666_s11 + $0x38] sm:$0xff]  ;;  %v571_v58 = vld [vmem:[#allocation7 + $0x2a8] sm:$0xff]  ;;  %v1881_v60 = vpack.c.bf16 %v553_v52, %v552_v51 }
  0xe0   : > { %1868 = vmatprep.subr.bf16.mxu1 %v1867_v19  ;;  %v451_v61 = vunpack.c.h.bf16 %v420_v54  ;;  %v453_v62 = vunpack.c.h.bf16 %v421_v55  ;;  %v554_v63 = vld [vmem:[#allocation7 + $0x220] sm:$0xff]  ;;  %v555_v0 = vld [vmem:[#allocation7 + $0x228] sm:$0xff]  ;;  %v1883_v1 = vpack.c.bf16 %v571_v58, %v570_v57  ;;  %v424_v3 = vld [vmem:[%s2666_s11 + $0x50] sm:$0xff]  ;;  %v450_v4 = vunpack.c.l.bf16 %v420_v54 }
  0xe1   : > { %v423_v2 = vld [vmem:[%s2666_s11 + $0x48] sm:$0xff]  ;;  %v572_v5 = vld [vmem:[#allocation7 + $0x2b0] sm:$0xff]  ;;  %v573_v6 = vld [vmem:[#allocation7 + $0x2b8] sm:$0xff]  ;;  %v452_v7 = vunpack.c.l.bf16 %v421_v55  ;;  %v1885_v8 = vpack.c.bf16 %v555_v0, %v554_v63  ;;  %v459_v10 = vunpack.c.h.bf16 %v424_v3  ;;  %v458_v19 = vunpack.c.l.bf16 %v424_v3 }
  0xe2   : > { %1838 = vmatpush3.bf16.msra.mxu0 %v1837_v27  ;;  %v457_v9 = vunpack.c.h.bf16 %v423_v2  ;;  %v556_v11 = vld [vmem:[#allocation7 + $0x230] sm:$0xff]  ;;  %v557_v12 = vld [vmem:[#allocation7 + $0x238] sm:$0xff]  ;;  %v1887_v13 = vpack.c.bf16 %v573_v6, %v572_v5  ;;  %v426_v14 = vld [vmem:[%s2666_s11 + $0x60] sm:$0xff]  ;;  %v456_v16 = vunpack.c.l.bf16 %v423_v2 }
  0xe3   : > { %1870 = vmatpush3.bf16.msra.mxu1 %v1869_v28  ;;  %1840 = vmatprep.subr.bf16.mxu0 %v1839_v29  ;;  %v427_v15 = vld [vmem:[%s2666_s11 + $0x68] sm:$0xff]  ;;  %v574_v17 = vld [vmem:[#allocation7 + $0x2c0] sm:$0xff]  ;;  %v1889_v20 = vpack.c.bf16 %v557_v12, %v556_v11  ;;  %v463_v21 = vunpack.c.h.bf16 %v426_v14  ;;  %v429_v26 = vld [vmem:[%s2666_s11 + $0x78] sm:$0xff]  ;;  %v462_v28 = vunpack.c.l.bf16 %v426_v14 }
  0xe4   : > { %1872 = vmatprep.subr.bf16.mxu1 %v1871_v33  ;;  %v575_v18 = vld [vmem:[#allocation7 + $0x2c8] sm:$0xff]  ;;  %v465_v22 = vunpack.c.h.bf16 %v427_v15  ;;  %v558_v23 = vld [vmem:[#allocation7 + $0x240] sm:$0xff]  ;;  %v576_v29 = vld [vmem:[#allocation7 + $0x2d0] sm:$0xff]  ;;  %v464_v31 = vunpack.c.l.bf16 %v427_v15  ;;  %v469_v33 = vunpack.c.h.bf16 %v429_v26  ;;  %v468_v40 = vunpack.c.l.bf16 %v429_v26 }
  0xe5   : > { %v559_v24 = vld [vmem:[#allocation7 + $0x248] sm:$0xff]  ;;  %v1891_v25 = vpack.c.bf16 %v575_v18, %v574_v17  ;;  %v430_v27 = vld [vmem:[%s2666_s11 + $0x80] sm:$0xff]  ;;  %v577_v30 = vld [vmem:[#allocation7 + $0x2d8] sm:$0xff] }
  0xe6   : > { %1842 = vmatpush3.bf16.msra.mxu0 %v1841_v37  ;;  %v1893_v32 = vpack.c.bf16 %v559_v24, %v558_v23  ;;  %v471_v34 = vunpack.c.h.bf16 %v430_v27  ;;  %v560_v35 = vld [vmem:[#allocation7 + $0x250] sm:$0xff]  ;;  %v561_v36 = vld [vmem:[#allocation7 + $0x258] sm:$0xff]  ;;  %v1895_v37 = vpack.c.bf16 %v577_v30, %v576_v29  ;;  %v578_v41 = vld [vmem:[#allocation7 + $0x2e0] sm:$0xff]  ;;  %v470_v43 = vunpack.c.l.bf16 %v430_v27 }
  0xe7   : > { %1874 = vmatpush3.bf16.msra.mxu1 %v1873_v38  ;;  %1876 = vmatprep.subr.bf16.mxu0 %v1875_v39  ;;  %v432_v38 = vld [vmem:[%s2666_s11 + $0x90] sm:$0xff]  ;;  %v433_v39 = vld [vmem:[%s2666_s11 + $0x98] sm:$0xff]  ;;  %v579_v42 = vld [vmem:[#allocation7 + $0x2e8] sm:$0xff] }
  0xe8   : > { %v475_v45 = vunpack.c.h.bf16 %v432_v38  ;;  %v477_v46 = vunpack.c.h.bf16 %v433_v39  ;;  %v436_v51 = vld [vmem:[%s2666_s11 + $0xb0] sm:$0xff]  ;;  %v474_v52 = vunpack.c.l.bf16 %v432_v38  ;;  %v581_v54 = vld [vmem:[#allocation7 + $0x2f8] sm:$0xff]  ;;  %v476_v55 = vunpack.c.l.bf16 %v433_v39  ;;  %v419_v3 = vld [vmem:[%s2666_s11 + $0x28] sm:$0xff] }
  0xe9   : > { %647 = vmatmul.mubr.f32.vlgmr.msra.gmra.mrb[0].mxu0 %v438_v44  ;;  %v1897_v44 = vpack.c.bf16 %v561_v36, %v560_v35  ;;  %v483_v58 = vunpack.c.h.bf16 %v436_v51  ;;  %v482_v0 = vunpack.c.l.bf16 %v436_v51  ;;  %v449_v5 = vunpack.c.h.bf16 %v419_v3  ;;  %v422_v6 = vld [vmem:[%s2666_s11 + $0x40] sm:$0xff]  ;;  %v428_v12 = vld [vmem:[%s2666_s11 + $0x70] sm:$0xff]  ;;  %v431_v15 = vld [vmem:[%s2666_s11 + $0x88] sm:$0xff] }
  0xea   : > { %752 = vmatmul.mubr.f32.vlgmr.msra.gmra.mrb[0].mxu1 %v440_v47  ;;  %1878 = vmatpush3.bf16.msra.mxu0 %v1877_v48  ;;  %v562_v47 = vld [vmem:[#allocation7 + $0x260] sm:$0xff]  ;;  %v563_v48 = vld [vmem:[#allocation7 + $0x268] sm:$0xff]  ;;  %v467_v14 = vunpack.c.h.bf16 %v428_v12  ;;  %v473_v17 = vunpack.c.h.bf16 %v431_v15 }
  0xeb   : > { %651 = vmatprep.mubr.f32.mxu0 %v445_v49  ;;  %756 = vmatprep.mubr.f32.mxu1 %v447_v50  ;;  %v1899_v49 = vpack.c.bf16 %v579_v42, %v578_v41  ;;  %v435_v50 = vld [vmem:[%s2666_s11 + $0xa8] sm:$0xff]  ;;  %v434_v18 = vld [vmem:[%s2666_s11 + $0xa0] sm:$0xff] }
  0xec   : > { %1880 = vmatprep.subr.bf16.mxu0 %v1879_v53  ;;  %v580_v53 = vld [vmem:[#allocation7 + $0x2f0] sm:$0xff]  ;;  %v481_v57 = vunpack.c.h.bf16 %v435_v50  ;;  %v480_v63 = vunpack.c.l.bf16 %v435_v50  ;;  %v942_v29 = vld [vmem:[#allocation10 + $0x18] sm:$0xff] }
  0xed   : > { %652 = vmatmul.mubr.f32.gmra.mrb[2].mxu0 %v444_v56  ;;  %v1901_v56 = vpack.c.bf16 %v563_v48, %v562_v47  ;;  %v940_v26 = vld [vmem:[#allocation10 + $0x8] sm:$0xff]  ;;  %v946_v35 = vld [vmem:[#allocation10 + $0x38] sm:$0xff] }
  0xee   : > { %757 = vmatmul.mubr.f32.gmra.mrb[2].mxu1 %v446_v59  ;;  %1882 = vmatpush3.bf16.msra.mxu0 %v1881_v60  ;;  %v564_v59 = vld [vmem:[#allocation7 + $0x270] sm:$0xff]  ;;  %v565_v60 = vld [vmem:[#allocation7 + $0x278] sm:$0xff] }
  0xef   : > { %656 = vmatprep.mubr.f32.mxu0 %v451_v61  ;;  %761 = vmatprep.mubr.f32.mxu1 %v453_v62  ;;  %v1903_v61 = vpack.c.bf16 %v581_v54, %v580_v53  ;;  %v416_v62 = vld [vmem:[%s2666_s11 + $0x10] sm:$0xff]  ;;  %v950_v41 = vld [vmem:[#allocation10 + $0x58] sm:$0xff] }
  0xf0   : > { %1884 = vmatprep.subr.bf16.mxu0 %v1883_v1  ;;  %v1905_v1 = vpack.c.bf16 %v565_v60, %v564_v59  ;;  %v443_v2 = vunpack.c.h.bf16 %v416_v62  ;;  %v948_v38 = vld [vmem:[#allocation10 + $0x48] sm:$0xff]  ;;  %v954_v47 = vld [vmem:[#allocation10 + $0x78] sm:$0xff] }
  0xf1   : > { %657 = vmatmul.mubr.f32.gmra.mrb[4].mxu0 %v450_v4  ;;  %v442_v4 = vunpack.c.l.bf16 %v416_v62 }
  0xf2   : > { %762 = vmatmul.mubr.f32.gmra.mrb[4].mxu1 %v452_v7  ;;  %1886 = vmatpush3.bf16.msra.mxu0 %v1885_v8  ;;  %v448_v7 = vunpack.c.l.bf16 %v419_v3  ;;  %v455_v8 = vunpack.c.h.bf16 %v422_v6 }
  0xf3   : > { %661 = vmatprep.mubr.f32.mxu0 %v457_v9  ;;  %766 = vmatprep.mubr.f32.mxu1 %v459_v10  ;;  %v425_v9 = vld [vmem:[%s2666_s11 + $0x58] sm:$0xff]  ;;  %v454_v10 = vunpack.c.l.bf16 %v422_v6 }
  0xf4   : > { %1888 = vmatprep.subr.bf16.mxu0 %v1887_v13  ;;  %v461_v11 = vunpack.c.h.bf16 %v425_v9  ;;  %v460_v13 = vunpack.c.l.bf16 %v425_v9 }
  0xf5   : > { %662 = vmatmul.mubr.f32.gmra.mrb[6].mxu0 %v456_v16  ;;  %v466_v16 = vunpack.c.l.bf16 %v428_v12 }
  0xf6   : > { %767 = vmatmul.mubr.f32.gmra.mrb[6].mxu1 %v458_v19  ;;  %1890 = vmatpush3.bf16.msra.mxu0 %v1889_v20  ;;  %v472_v19 = vunpack.c.l.bf16 %v431_v15  ;;  %v479_v20 = vunpack.c.h.bf16 %v434_v18 }
  0xf7   : > { %666 = vmatprep.mubr.f32.mxu0 %v463_v21  ;;  %771 = vmatprep.mubr.f32.mxu1 %v465_v22  ;;  %v437_v21 = vld [vmem:[%s2666_s11 + $0xb8] sm:$0xff]  ;;  %v478_v22 = vunpack.c.l.bf16 %v434_v18 }
  0xf8   : > { %1892 = vmatprep.subr.bf16.mxu0 %v1891_v25  ;;  %v485_v23 = vunpack.c.h.bf16 %v437_v21  ;;  %v484_v24 = vunpack.c.l.bf16 %v437_v21  ;;  %v939_v25 = vld [vmem:[#allocation10] sm:$0xff] }
  0xf9   : > { %667 = vmatmul.mubr.f32.gmra.mrb[8].mxu0 %v462_v28  ;;  %v1907_v27 = vpack.c.bf16 %v940_v26, %v939_v25  ;;  %v941_v28 = vld [vmem:[#allocation10 + $0x10] sm:$0xff] }
  0xfa   : > { %772 = vmatmul.mubr.f32.gmra.mrb[8].mxu1 %v464_v31  ;;  %1894 = vmatpush3.bf16.msra.mxu0 %v1893_v32  ;;  %v1911_v30 = vpack.c.bf16 %v942_v29, %v941_v28  ;;  %v943_v31 = vld [vmem:[#allocation10 + $0x20] sm:$0xff]  ;;  %v944_v32 = vld [vmem:[#allocation10 + $0x28] sm:$0xff] }
  0xfb   : > { %671 = vmatprep.mubr.f32.mxu0 %v469_v33  ;;  %776 = vmatprep.mubr.f32.mxu1 %v471_v34  ;;  %v1915_v33 = vpack.c.bf16 %v944_v32, %v943_v31  ;;  %v945_v34 = vld [vmem:[#allocation10 + $0x30] sm:$0xff] }
  0xfc   : > { %1896 = vmatprep.subr.bf16.mxu0 %v1895_v37  ;;  %1908 = vmatprep.subr.bf16.mxu1 %v1907_v27  ;;  %v1919_v36 = vpack.c.bf16 %v946_v35, %v945_v34  ;;  %v947_v37 = vld [vmem:[#allocation10 + $0x40] sm:$0xff] }
  0xfd   : > { %672 = vmatmul.mubr.f32.gmra.mrb[10].mxu0 %v468_v40  ;;  %1910 = vmatpush3.bf16.msra.mxu1 %v1907_v27  ;;  %v1923_v39 = vpack.c.bf16 %v948_v38, %v947_v37  ;;  %v949_v40 = vld [vmem:[#allocation10 + $0x50] sm:$0xff] }
  0xfe   : > { %777 = vmatmul.mubr.f32.gmra.mrb[10].mxu1 %v470_v43  ;;  %1898 = vmatpush3.bf16.msra.mxu0 %v1897_v44  ;;  %v1927_v42 = vpack.c.bf16 %v950_v41, %v949_v40  ;;  %v951_v43 = vld [vmem:[#allocation10 + $0x60] sm:$0xff]  ;;  %v952_v44 = vld [vmem:[#allocation10 + $0x68] sm:$0xff] }
  0xff   : > { %676 = vmatprep.mubr.f32.mxu0 %v475_v45  ;;  %781 = vmatprep.mubr.f32.mxu1 %v477_v46  ;;  %v1931_v45 = vpack.c.bf16 %v952_v44, %v951_v43  ;;  %v953_v46 = vld [vmem:[#allocation10 + $0x70] sm:$0xff]  ;;  %v1567_v44 = vld [vmem:[#allocation9] ss:$0 sm:$0xff] }
 0x100   : > { %1900 = vmatprep.subr.bf16.mxu0 %v1899_v49  ;;  %1912 = vmatprep.subr.bf16.mxu1 %v1911_v30  ;;  %v1935_v48 = vpack.c.bf16 %v954_v47, %v953_v46 }
 0x101   : > { %677 = vmatmul.mubr.f32.gmra.mrb[12].mxu0 %v474_v52  ;;  %1914 = vmatpush3.bf16.msra.mxu1 %v1911_v30 }
 0x102   : > { %782 = vmatmul.mubr.f32.gmra.mrb[12].mxu1 %v476_v55  ;;  %1902 = vmatpush3.bf16.msra.mxu0 %v1901_v56 }
 0x103   : > { %681 = vmatprep.mubr.f32.mxu0 %v481_v57  ;;  %786 = vmatprep.mubr.f32.mxu1 %v483_v58 }
 0x104   : > { %1904 = vmatprep.subr.bf16.mxu0 %v1903_v61  ;;  %1916 = vmatprep.subr.bf16.mxu1 %v1915_v33 }
 0x105   : > { %682 = vmatmul.mubr.f32.gmra.mrb[14].mxu0 %v480_v63  ;;  %1918 = vmatpush3.bf16.msra.mxu1 %v1915_v33 }
 0x106   : > { %787 = vmatmul.mubr.f32.gmra.mrb[14].mxu1 %v482_v0  ;;  %1906 = vmatpush3.bf16.msra.mxu0 %v1905_v1 }
 0x107   : > { %856 = vmatprep.mubr.f32.mxu0 %v443_v2  ;;  %1920 = vmatprep.subr.bf16.mxu1 %v1919_v36 }
 0x109   : > { %857 = vmatmul.mubr.f32.vlgmr.msra.gmra.mrb[16].mxu0 %v442_v4  ;;  %1922 = vmatpush3.bf16.msra.mxu1 %v1919_v36 }
 0x10a   : > { %861 = vmatprep.mubr.f32.mxu0 %v449_v5  ;;  %1924 = vmatprep.subr.bf16.mxu1 %v1923_v39 }
 0x10d   : > { %862 = vmatmul.mubr.f32.gmra.mrb[18].mxu0 %v448_v7  ;;  %1926 = vmatpush3.bf16.msra.mxu1 %v1923_v39 }
 0x10e   : > { %866 = vmatprep.mubr.f32.mxu0 %v455_v8  ;;  %1928 = vmatprep.subr.bf16.mxu1 %v1927_v42 }
 0x111   : > { %867 = vmatmul.mubr.f32.gmra.mrb[20].mxu0 %v454_v10  ;;  %1930 = vmatpush3.bf16.msra.mxu1 %v1927_v42 }
 0x112   : > { %871 = vmatprep.mubr.f32.mxu0 %v461_v11  ;;  %1932 = vmatprep.subr.bf16.mxu1 %v1931_v45 }
 0x115   : > { %872 = vmatmul.mubr.f32.gmra.mrb[22].mxu0 %v460_v13  ;;  %1934 = vmatpush3.bf16.msra.mxu1 %v1931_v45 }
 0x116   : > { %876 = vmatprep.mubr.f32.mxu0 %v467_v14  ;;  %1936 = vmatprep.subr.bf16.mxu1 %v1935_v48 }
 0x119   : > { %877 = vmatmul.mubr.f32.gmra.mrb[24].mxu0 %v466_v16  ;;  %1938 = vmatpush3.bf16.msra.mxu1 %v1935_v48 }
 0x11a   : > { %881 = vmatprep.mubr.f32.mxu0 %v473_v17 }
 0x11d   : > { %882 = vmatmul.mubr.f32.gmra.mrb[26].mxu0 %v472_v19 }
 0x11e   : > { %886 = vmatprep.mubr.f32.mxu0 %v479_v20 }
 0x121   : > { %887 = vmatmul.mubr.f32.gmra.mrb[28].mxu0 %v478_v22 }
 0x122   : > { %891 = vmatprep.mubr.f32.mxu0 %v485_v23 }
 0x125   : > { %892 = vmatmul.mubr.f32.gmra.mrb[30].mxu0 %v484_v24 }
 0x1bc   : > { %v1607_v49 = vpop.f32.mrb[0].mxu0 }
 0x1bd   : > { %v1663_v50 = vpop.f32.mrb[0].mxu1  ;;  %v1608_v51 = vpop.f32.mrb[1].mxu0 }
 0x1be   : > { %v1609_v52 = vadd.f32 %v1608_v51, %v1607_v49  ;;  %v1664_v53 = vpop.f32.mrb[1].mxu1 }
 0x1bf   : > { %v1665_v54 = vadd.f32 %v1664_v53, %v1663_v50 }
 0x1c0   : > { %v1610_v55 = vpop.f32.mrb[2].mxu0 }
 0x1c1   : > { %v754_v56 = vadd.f32 %v1665_v54, %v1609_v52  ;;  %v1666_v57 = vpop.f32.mrb[2].mxu1  ;;  %v1611_v58 = vpop.f32.mrb[3].mxu0 }
 0x1c2   : > { %v1612_v59 = vadd.f32 %v1611_v58, %v1610_v55  ;;  %v1667_v60 = vpop.f32.mrb[3].mxu1 }
 0x1c3   : > { %v1668_v61 = vadd.f32 %v1667_v60, %v1666_v57 }
 0x1c4   : > { %v1613_v62 = vpop.f32.mrb[4].mxu0 }
 0x1c5   : > { %v759_v63 = vadd.f32 %v1668_v61, %v1612_v59  ;;  %v1669_v0 = vpop.f32.mrb[4].mxu1  ;;  %v1614_v1 = vpop.f32.mrb[5].mxu0 }
 0x1c6   : > { %v1615_v2 = vadd.f32 %v1614_v1, %v1613_v62  ;;  %v1670_v3 = vpop.f32.mrb[5].mxu1 }
 0x1c7   : > { %v1671_v4 = vadd.f32 %v1670_v3, %v1669_v0 }
 0x1c8   : > { %v1616_v5 = vpop.f32.mrb[6].mxu0 }
 0x1c9   : > { %v764_v6 = vadd.f32 %v1671_v4, %v1615_v2  ;;  %v1672_v7 = vpop.f32.mrb[6].mxu1  ;;  %v1617_v8 = vpop.f32.mrb[7].mxu0 }
 0x1ca   : > { %v1618_v9 = vadd.f32 %v1617_v8, %v1616_v5  ;;  %v1673_v10 = vpop.f32.mrb[7].mxu1 }
 0x1cb   : > { %v1674_v11 = vadd.f32 %v1673_v10, %v1672_v7 }
 0x1cc   : > { %v1619_v12 = vpop.f32.mrb[8].mxu0 }
 0x1cd   : > { %v769_v13 = vadd.f32 %v1674_v11, %v1618_v9  ;;  %v1675_v14 = vpop.f32.mrb[8].mxu1  ;;  %v1620_v15 = vpop.f32.mrb[9].mxu0 }
 0x1ce   : > { %v1621_v16 = vadd.f32 %v1620_v15, %v1619_v12  ;;  %v1676_v17 = vpop.f32.mrb[9].mxu1 }
 0x1cf   : > { %v1677_v18 = vadd.f32 %v1676_v17, %v1675_v14 }
 0x1d0   : > { %v1622_v19 = vpop.f32.mrb[10].mxu0 }
 0x1d1   : > { %v774_v20 = vadd.f32 %v1677_v18, %v1621_v16  ;;  %v1678_v21 = vpop.f32.mrb[10].mxu1  ;;  %v1623_v22 = vpop.f32.mrb[11].mxu0  ;;  %v1568_v18 = vld [vmem:[#allocation12] ss:$0 sm:$0xff] }
 0x1d2   : > { %v1624_v23 = vadd.f32 %v1623_v22, %v1622_v19  ;;  %v1679_v24 = vpop.f32.mrb[11].mxu1 }
 0x1d3   : > { %v1680_v25 = vadd.f32 %v1679_v24, %v1678_v21 }
 0x1d4   : > { %v1625_v26 = vpop.f32.mrb[12].mxu0 }
 0x1d5   : > { %v779_v27 = vadd.f32 %v1680_v25, %v1624_v23  ;;  %v1681_v28 = vpop.f32.mrb[12].mxu1  ;;  %v1626_v29 = vpop.f32.mrb[13].mxu0  ;;  %v1569_v23 = vld [vmem:[#allocation13] ss:$0 sm:$0xff] }
 0x1d6   : > { %v1627_v30 = vadd.f32 %v1626_v29, %v1625_v26  ;;  %v1682_v31 = vpop.f32.mrb[13].mxu1 }
 0x1d7   : > { %v1683_v32 = vadd.f32 %v1682_v31, %v1681_v28 }
 0x1d8   : > { %v1628_v33 = vpop.f32.mrb[14].mxu0 }
 0x1d9   : > { %v784_v34 = vadd.f32 %v1683_v32, %v1627_v30  ;;  %v1684_v35 = vpop.f32.mrb[14].mxu1  ;;  %v1629_v36 = vpop.f32.mrb[15].mxu0 }
 0x1da   : > { %v1630_v37 = vadd.f32 %v1629_v36, %v1628_v33  ;;  %v1685_v38 = vpop.f32.mrb[15].mxu1 }
 0x1db   : > { %v1686_v39 = vadd.f32 %v1685_v38, %v1684_v35 }
 0x1dc   : > { %v1719_v40 = vpop.f32.mrb[16].mxu0 }
 0x1dd   : > { %v789_v41 = vadd.f32 %v1686_v39, %v1630_v37  ;;  %v1720_v42 = vpop.f32.mrb[17].mxu0 }
 0x1de   : > { %v1721_v43 = vadd.f32 %v1720_v42, %v1719_v40 }
 0x1e0   : > { %v859_v45 = vadd.f32 %v1721_v43, %v754_v56  ;;  %v1722_v46 = vpop.f32.mrb[18].mxu0 }
 0x1e1   : > { %v1723_v47 = vpop.f32.mrb[19].mxu0 }
 0x1e2   : > { %v1724_v48 = vadd.f32 %v1723_v47, %v1722_v46  ;;  %v2708_v49 = vadd.f32 %v1567_v44, %v859_v45 }
 0x1e4   : > { %v864_v50 = vadd.f32 %v1724_v48, %v759_v63  ;;  %v1725_v51 = vpop.f32.mrb[20].mxu0  ;;  %1799 = vmatprep.mubr.f32.mxu1 %v2708_v49 }
 0x1e5   : > { %v1726_v52 = vpop.f32.mrb[21].mxu0 }
 0x1e6   : > { %v2711_v53 = vadd.f32 %v1567_v44, %v864_v50  ;;  %v1727_v54 = vadd.f32 %v1726_v52, %v1725_v51 }
 0x1e8   : > { %v869_v55 = vadd.f32 %v1727_v54, %v764_v6  ;;  %v1728_v57 = vpop.f32.mrb[22].mxu0  ;;  %1800 = vmatmul.mubr.f32.vlgmr.msra.gmra.mrb[16].mxu1 %v2711_v53 }
 0x1e9   : > { %v1729_v58 = vpop.f32.mrb[23].mxu0 }
 0x1ea   : > { %v1730_v59 = vadd.f32 %v1729_v58, %v1728_v57  ;;  %v2714_v56 = vadd.f32 %v1567_v44, %v869_v55 }
 0x1ec   : > { %v874_v60 = vadd.f32 %v1730_v59, %v769_v13  ;;  %v1731_v61 = vpop.f32.mrb[24].mxu0  ;;  %1802 = vmatprep.mubr.f32.mxu1 %v2714_v56 }
 0x1ed   : > { %v1732_v62 = vpop.f32.mrb[25].mxu0 }
 0x1ee   : > { %v1733_v63 = vadd.f32 %v1732_v62, %v1731_v61  ;;  %v2717_v0 = vadd.f32 %v1567_v44, %v874_v60 }
 0x1f0   : > { %v879_v1 = vadd.f32 %v1733_v63, %v774_v20  ;;  %v1734_v2 = vpop.f32.mrb[26].mxu0  ;;  %1803 = vmatmul.mubr.f32.gmra.mrb[18].mxu1 %v2717_v0  ;;  %v2370_v63 = vmov 0  }
 0x1f1   : > { %v1735_v3 = vpop.f32.mrb[27].mxu0  ;;  %2061 = vset.pattern.permute.xlu1 %v2370_v63  ;;  %2060 = vset.pattern.permute.xlu0 %v2370_v63 }
 0x1f2   : > { %v1736_v4 = vadd.f32 %v1735_v3, %v1734_v2  ;;  %v2720_v5 = vadd.f32 %v1567_v44, %v879_v1  ;;  %v1570_v1 = vld [vmem:[#allocation3] ss:$0 sm:$0xff] }
 0x1f4   : > { %v884_v6 = vadd.f32 %v1736_v4, %v779_v27  ;;  %v1737_v7 = vpop.f32.mrb[28].mxu0  ;;  %1805 = vmatprep.mubr.f32.mxu1 %v2720_v5 }
 0x1f5   : > { %v1738_v8 = vpop.f32.mrb[29].mxu0 }
 0x1f6   : > { %v1739_v9 = vadd.f32 %v1738_v8, %v1737_v7  ;;  %v2723_v10 = vadd.f32 %v1567_v44, %v884_v6 }
 0x1f8   : > { %v889_v11 = vadd.f32 %v1739_v9, %v784_v34  ;;  %v1740_v12 = vpop.f32.mrb[30].mxu0  ;;  %1806 = vmatmul.mubr.f32.gmra.mrb[20].mxu1 %v2723_v10 }
 0x1f9   : > { %v1741_v13 = vpop.f32.mrb[31].mxu0 }
 0x1fa   : > { %v1742_v14 = vadd.f32 %v1741_v13, %v1740_v12  ;;  %v2726_v15 = vadd.f32 %v1567_v44, %v889_v11 }
 0x1fc   : > { %v894_v16 = vadd.f32 %v1742_v14, %v789_v41  ;;  %1808 = vmatprep.mubr.f32.mxu1 %v2726_v15 }
 0x1fe   : > { %v2729_v17 = vadd.f32 %v1567_v44, %v894_v16 }
 0x200   : > { %1809 = vmatmul.mubr.f32.gmra.mrb[22].mxu1 %v2729_v17 }
 0x2bb   : > { %v1801_v19 = vpop.f32.mrb[16].mxu1 }
 0x2bc   : > { %v1034_v20 = vadd.f32 %v1801_v19, %v1568_v18  ;;  %v1028_v21 = vpop.f32.mrb[17].mxu1 }
 0x2bd   : > { %v1029_v22 = vadd.f32 %v1568_v18, %v1028_v21 }
 0x2be   : > { %v1068_v24 = vmax.f32 %v1034_v20, 0.0 }
 0x2bf   : > { %v1067_v25 = vmax.f32 %v1029_v22, 0.0 }
 0x2c0   : > { %v1083_v26 = vmul.f32 %v1569_v23, %v1068_v24 }
 0x2c1   : > { %v1082_v28 = vmul.f32 %v1569_v23, %v1067_v25 }
 0x2c2   : > { %v1094_v27 = vsel %vm1090_vm0, %v1083_v26, 0.0 }
 0x2c3   : > { %1095 = vadd.xlane.f32.xlu0 %v1094_v27  ;;  %v1804_v29 = vpop.f32.mrb[18].mxu1  ;;  %v1091_v34 = vsel %vm1090_vm0, %v1082_v28, 0.0 }
 0x2c4   : > { %v1044_v30 = vadd.f32 %v1804_v29, %v1568_v18  ;;  %v1038_v31 = vpop.f32.mrb[19].mxu1 }
 0x2c5   : > { %v1039_v32 = vadd.f32 %v1568_v18, %v1038_v31 }
 0x2c6   : > { %v1070_v33 = vmax.f32 %v1044_v30, 0.0 }
 0x2c7   : > { %v1069_v35 = vmax.f32 %v1039_v32, 0.0  ;;  %1092 = vadd.xlane.f32.xlu0 %v1091_v34 }
 0x2c8   : > { %v1085_v36 = vmul.f32 %v1569_v23, %v1070_v33 }
 0x2c9   : > { %v1084_v38 = vmul.f32 %v1569_v23, %v1069_v35 }
 0x2ca   : > { %v1100_v37 = vsel %vm1090_vm0, %v1085_v36, 0.0 }
 0x2cb   : > { %1101 = vadd.xlane.f32.xlu1 %v1100_v37  ;;  %v1807_v39 = vpop.f32.mrb[20].mxu1  ;;  %v1097_v44 = vsel %vm1090_vm0, %v1084_v38, 0.0 }
 0x2cc   : > { %v1054_v40 = vadd.f32 %v1807_v39, %v1568_v18  ;;  %v1048_v41 = vpop.f32.mrb[21].mxu1 }
 0x2cd   : > { %v1049_v42 = vadd.f32 %v1568_v18, %v1048_v41 }
 0x2ce   : > { %v1072_v43 = vmax.f32 %v1054_v40, 0.0 }
 0x2cf   : > { %v1071_v45 = vmax.f32 %v1049_v42, 0.0  ;;  %1098 = vadd.xlane.f32.xlu1 %v1097_v44 }
 0x2d0   : > { %v1087_v46 = vmul.f32 %v1569_v23, %v1072_v43 }
 0x2d1   : > { %v1086_v47 = vmul.f32 %v1569_v23, %v1071_v45 }
 0x2d2   : > { %v1106_v48 = vsel %vm1090_vm0, %v1087_v46, 0.0 }
 0x2d3   : > { %v1810_v50 = vpop.f32.mrb[22].mxu1  ;;  %1107 = vadd.xlane.f32.xlu1 %v1106_v48  ;;  %v1103_v51 = vsel %vm1090_vm0, %v1086_v47, 0.0 }
 0x2d4   : > { %v1064_v52 = vadd.f32 %v1810_v50, %v1568_v18  ;;  %v1058_v54 = vpop.f32.mrb[23].mxu1  ;;  %1104 = vadd.xlane.f32.xlu0 %v1103_v51 }
 0x2d5   : > { %v1059_v55 = vadd.f32 %v1568_v18, %v1058_v54 }
 0x2d6   : > { %v1074_v57 = vmax.f32 %v1064_v52, 0.0 }
 0x2d7   : > { %v1073_v58 = vmax.f32 %v1059_v55, 0.0 }
 0x2d8   : > { %v1089_v59 = vmul.f32 %v1569_v23, %v1074_v57 }
 0x2d9   : > { %v1088_v60 = vmul.f32 %v1569_v23, %v1073_v58 }
 0x2da   : > { %v1112_v61 = vsel %vm1090_vm0, %v1089_v59, 0.0 }
 0x2db   : > { %1113 = vadd.xlane.f32.xlu1 %v1112_v61  ;;  %v1109_v62 = vsel %vm1090_vm0, %v1088_v60, 0.0 }
 0x2dc   : > { %1110 = vadd.xlane.f32.xlu0 %v1109_v62 }
 0x350   : > { %v1096_v2 = vpop.xlane.xlu0 %1095 }
 0x351   : > { %v1123_v3 = vadd.f32 %v1570_v1, %v1096_v2 }
 0x353   : > { %v1138_v4 = vsel %vm1130_vm1, %v1123_v3, -inf }
 0x354   : > { %v1139_v6 = vrot.slane %v1138_v4, 4  ;;  %v1093_v7 = vpop.xlane.xlu0 %1092 }
 0x355   : > { %v1122_v8 = vadd.f32 %v1570_v1, %v1093_v7 }
 0x356   : > { %v1140_v9 = vmax.f32 %v1138_v4, %v1139_v6 }
 0x357   : > { %v1131_v11 = vsel %vm1130_vm1, %v1122_v8, -inf }
 0x358   : > { %v1141_v12 = vrot.slane %v1140_v9, 2  ;;  %v1132_v13 = vrot.slane %v1131_v11, 4  ;;  %v1102_v14 = vpop.xlane.xlu1 %1101 }
 0x359   : > { %v1125_v16 = vadd.f32 %v1570_v1, %v1102_v14 }
 0x35a   : > { %v1142_v18 = vmax.f32 %v1140_v9, %v1141_v12  ;;  %v1133_v19 = vmax.f32 %v1131_v11, %v1132_v13 }
 0x35b   : > { %v1152_v20 = vsel %vm1130_vm1, %v1125_v16, -inf }
 0x35c   : > { %v1143_v21 = vrot.slane %v1142_v18, 1  ;;  %v1134_v22 = vrot.slane %v1133_v19, 2  ;;  %v1153_v23 = vrot.slane %v1152_v20, 4  ;;  %v1099_v24 = vpop.xlane.xlu1 %1098 }
 0x35d   : > { %v1124_v25 = vadd.f32 %v1570_v1, %v1099_v24 }
 0x35e   : > { %v1144_v26 = vmax.f32 %v1142_v18, %v1143_v21  ;;  %v1135_v27 = vmax.f32 %v1133_v19, %v1134_v22  ;;  %v1154_v28 = vmax.f32 %v1152_v20, %v1153_v23 }
 0x35f   : > { %v1145_v29 = vsel %vm1130_vm1, %v1124_v25, -inf }
 0x360   : > { %v1188_v30 = vsub.f32 %v1123_v3, %v1144_v26  ;;  %v1136_v31 = vrot.slane %v1135_v27, 1  ;;  %v1155_v32 = vrot.slane %v1154_v28, 2  ;;  %v1146_v33 = vrot.slane %v1145_v29, 4  ;;  %v1108_v34 = vpop.xlane.xlu1 %1107 }
 0x361   : > { %v1127_v35 = vadd.f32 %v1570_v1, %v1108_v34  ;;  %v1105_v36 = vpop.xlane.xlu0 %1104 }
 0x362   : > { %v1197_v37 = vmul.f32 1.442695, %v1188_v30  ;;  %v1137_v38 = vmax.f32 %v1135_v27, %v1136_v31  ;;  %v1156_v39 = vmax.f32 %v1154_v28, %v1155_v32  ;;  %v1147_v40 = vmax.f32 %v1145_v29, %v1146_v33 }
 0x363   : > { %v1166_v41 = vsel %vm1130_vm1, %v1127_v35, -inf  ;;  %v1126_v42 = vadd.f32 %v1570_v1, %v1105_v36 }
 0x364   : > { %2062 = vpow2.f32 %v1197_v37  ;;  %v1187_v43 = vsub.f32 %v1122_v8, %v1137_v38  ;;  %v1157_v44 = vrot.slane %v1156_v39, 1  ;;  %v1148_v45 = vrot.slane %v1147_v40, 2 }
 0x365   : > { %v1167_v46 = vrot.slane %v1166_v41, 4  ;;  %v1159_v47 = vsel %vm1130_vm1, %v1126_v42, -inf }
 0x366   : > { %v1195_v48 = vmul.f32 1.442695, %v1187_v43  ;;  %v1158_v50 = vmax.f32 %v1156_v39, %v1157_v44  ;;  %v1149_v51 = vmax.f32 %v1147_v40, %v1148_v45  ;;  %v1160_v52 = vrot.slane %v1159_v47, 4 }
 0x367   : > { %v1168_v54 = vmax.f32 %v1166_v41, %v1167_v46 }
 0x368   : > { %2064 = vpow2.f32 %v1195_v48  ;;  %v1190_v55 = vsub.f32 %v1125_v16, %v1158_v50  ;;  %v1150_v57 = vrot.slane %v1149_v51, 1  ;;  %v1161_v58 = vmax.f32 %v1159_v47, %v1160_v52  ;;  %v1114_v59 = vpop.xlane.xlu1 %1113 }
 0x369   : > { %v1169_v60 = vrot.slane %v1168_v54, 2  ;;  %v1129_v61 = vadd.f32 %v1570_v1, %v1114_v59  ;;  %v1111_v62 = vpop.xlane.xlu0 %1110 }
 0x36a   : > { %v1201_v63 = vmul.f32 1.442695, %v1190_v55  ;;  %v1151_v2 = vmax.f32 %v1149_v51, %v1150_v57  ;;  %v1162_v3 = vrot.slane %v1161_v58, 2  ;;  %v1128_v4 = vadd.f32 %v1570_v1, %v1111_v62 }
 0x36b   : > { %v1170_v6 = vmax.f32 %v1168_v54, %v1169_v60  ;;  %v1180_v7 = vsel %vm1130_vm1, %v1129_v61, -inf }
 0x36c   : > { %2066 = vpow2.f32 %v1201_v63  ;;  %v1189_v8 = vsub.f32 %v1124_v25, %v1151_v2  ;;  %v1163_v9 = vmax.f32 %v1161_v58, %v1162_v3  ;;  %v1181_v11 = vrot.slane %v1180_v7, 4 }
 0x36d   : > { %v1171_v12 = vrot.slane %v1170_v6, 1  ;;  %v1173_v13 = vsel %vm1130_vm1, %v1128_v4, -inf }
 0x36e   : > { %v2748_v14 = vpop.eup %2062  ;;  %v1199_v16 = vmul.f32 1.442695, %v1189_v8  ;;  %v1164_v18 = vrot.slane %v1163_v9, 1  ;;  %v1182_v19 = vmax.f32 %v1180_v7, %v1181_v11  ;;  %v1174_v20 = vrot.slane %v1173_v13, 4 }
 0x36f   : > { %v1218_v21 = vsel %vm1130_vm1, %v2748_v14, 0.0  ;;  %v1172_v1 = vmax.f32 %v1170_v6, %v1171_v12 }
 0x370   : > { %v1219_v22 = vrot.slane %v1218_v21, 4  ;;  %2068 = vpow2.f32 %v1199_v16  ;;  %v1165_v23 = vmax.f32 %v1163_v9, %v1164_v18  ;;  %v1183_v24 = vrot.slane %v1182_v19, 2 }
 0x371   : > { %v1192_v25 = vsub.f32 %v1127_v35, %v1172_v1  ;;  %v1175_v26 = vmax.f32 %v1173_v13, %v1174_v20 }
 0x372   : > { %v2752_v27 = vpop.eup %2064  ;;  %v1220_v28 = vadd.f32 %v1219_v22, %v1218_v21  ;;  %v1191_v29 = vsub.f32 %v1126_v42, %v1165_v23  ;;  %v1184_v30 = vmax.f32 %v1182_v19, %v1183_v24 }
 0x373   : > { %v1211_v31 = vsel %vm1130_vm1, %v2752_v27, 0.0  ;;  %v1205_v32 = vmul.f32 1.442695, %v1192_v25  ;;  %v1176_v33 = vrot.slane %v1175_v26, 2 }
 0x374   : > { %v1221_v34 = vrot.slane %v1220_v28, 2  ;;  %v1212_v36 = vrot.slane %v1211_v31, 4  ;;  %v1203_v37 = vmul.f32 1.442695, %v1191_v29  ;;  %v1185_v38 = vrot.slane %v1184_v30, 1 }
 0x375   : > { %2070 = vpow2.f32 %v1205_v32  ;;  %v1177_v39 = vmax.f32 %v1175_v26, %v1176_v33 }
 0x376   : > { %v2756_v40 = vpop.eup %2066  ;;  %v1213_v35 = vadd.f32 %v1212_v36, %v1211_v31  ;;  %2072 = vpow2.f32 %v1203_v37  ;;  %v1186_v41 = vmax.f32 %v1184_v30, %v1185_v38  ;;  %v1222_v43 = vadd.f32 %v1221_v34, %v1220_v28 }
 0x377   : > { %v1232_v42 = vsel %vm1130_vm1, %v2756_v40, 0.0  ;;  %v1178_v44 = vrot.slane %v1177_v39, 1 }
 0x378   : > { %v1214_v45 = vrot.slane %v1213_v35, 2  ;;  %v1233_v46 = vrot.slane %v1232_v42, 4  ;;  %v1194_v47 = vsub.f32 %v1129_v61, %v1186_v41  ;;  %v1223_v48 = vrot.slane %v1222_v43, 1 }
 0x379   : > { %v1179_v50 = vmax.f32 %v1177_v39, %v1178_v44 }
 0x37a   : > { %v2760_v51 = vpop.eup %2068  ;;  %v1234_v52 = vadd.f32 %v1233_v46, %v1232_v42  ;;  %v1209_v54 = vmul.f32 1.442695, %v1194_v47  ;;  %v1224_v55 = vadd.f32 %v1223_v48, %v1222_v43  ;;  %v1215_v57 = vadd.f32 %v1214_v45, %v1213_v35 }
 0x37b   : > { %v1225_v58 = vsel %vm1130_vm1, %v2760_v51, 0.0  ;;  %v1193_v59 = vsub.f32 %v1128_v4, %v1179_v50 }
 0x37c   : > { %v1235_v60 = vrot.slane %v1234_v52, 2  ;;  %v1226_v62 = vrot.slane %v1225_v58, 4  ;;  %2074 = vpow2.f32 %v1209_v54  ;;  %v1216_v63 = vrot.slane %v1215_v57, 1 }
 0x37d   : > { %v1207_v2 = vmul.f32 1.442695, %v1193_v59  ;;  %2076 = vrcp.f32 %v1224_v55 }
 0x37e   : > { %v1227_v3 = vadd.f32 %v1226_v62, %v1225_v58  ;;  %v1217_v61 = vadd.f32 %v1216_v63, %v1215_v57  ;;  %v1236_v6 = vadd.f32 %v1235_v60, %v1234_v52 }
 0x37f   : > { %v2071_v7 = vpop.eup %2070  ;;  %2078 = vpow2.f32 %v1207_v2 }
 0x380   : > { %v2073_v8 = vpop.eup %2072  ;;  %v1228_v9 = vrot.slane %v1227_v3, 2  ;;  %v1246_v11 = vsel %vm1130_vm1, %v2071_v7, 0.0  ;;  %2080 = vrcp.f32 %v1217_v61  ;;  %v1237_v12 = vrot.slane %v1236_v6, 1 }
 0x381   : > { %v1247_v13 = vrot.slane %v1246_v11, 4  ;;  %v1239_v4 = vsel %vm1130_vm1, %v2073_v8, 0.0 }
 0x382   : > { %v1240_v16 = vrot.slane %v1239_v4, 4  ;;  %v1238_v18 = vadd.f32 %v1237_v12, %v1236_v6  ;;  %v1229_v19 = vadd.f32 %v1228_v9, %v1227_v3 }
 0x383   : > { %v1248_v20 = vadd.f32 %v1247_v13, %v1246_v11 }
 0x384   : > { %v1241_v21 = vadd.f32 %v1240_v16, %v1239_v4  ;;  %2082 = vrcp.f32 %v1238_v18  ;;  %v1230_v1 = vrot.slane %v1229_v19, 1 }
 0x385   : > { %v1249_v22 = vrot.slane %v1248_v20, 2 }
 0x386   : > { %v2075_v23 = vpop.eup %2074  ;;  %v1242_v24 = vrot.slane %v1241_v21, 2  ;;  %v1231_v25 = vadd.f32 %v1230_v1, %v1229_v19 }
 0x387   : > { %v2077_v26 = vpop.eup %2076  ;;  %v1260_v28 = vsel %vm1130_vm1, %v2075_v23, 0.0  ;;  %v1250_v29 = vadd.f32 %v1249_v22, %v1248_v20 }
 0x388   : > { %v1261_v30 = vrot.slane %v1260_v28, 4  ;;  %v1276_v31 = vmul.f32 %v2077_v26, %v2748_v14  ;;  %2084 = vrcp.f32 %v1231_v25  ;;  %v1243_v32 = vadd.f32 %v1242_v24, %v1241_v21 }
 0x389   : > { %v2079_v33 = vpop.eup %2078  ;;  %v1251_v34 = vrot.slane %v1250_v29, 1 }
 0x38a   : > { %v2081_v36 = vpop.eup %2080  ;;  %v1262_v37 = vadd.f32 %v1261_v30, %v1260_v28  ;;  %v1253_v38 = vsel %vm1130_vm1, %v2079_v33, 0.0  ;;  %1290 = vperm.xlu1 %2061, %v1276_v31   ;;  %v1244_v39 = vrot.slane %v1243_v32, 1 }
 0x38b   : > { %v1254_v35 = vrot.slane %v1253_v38, 4  ;;  %v1275_v41 = vmul.f32 %v2081_v36, %v2752_v27  ;;  %v1252_v43 = vadd.f32 %v1251_v34, %v1250_v29 }
 0x38c   : > { %v1263_v42 = vrot.slane %v1262_v37, 2  ;;  %v1245_v44 = vadd.f32 %v1244_v39, %v1243_v32 }
 0x38d   : > { %v1255_v45 = vadd.f32 %v1254_v35, %v1253_v38  ;;  %1285 = vperm.xlu0 %2060, %v1275_v41   ;;  %2086 = vrcp.f32 %v1252_v43 }
 0x38e   : > { %v2083_v14 = vpop.eup %2082  ;;  %v1264_v46 = vadd.f32 %v1263_v42, %v1262_v37  ;;  %2088 = vrcp.f32 %v1245_v44 }
 0x38f   : > { %v1256_v47 = vrot.slane %v1255_v45, 2  ;;  %v1278_v48 = vmul.f32 %v2083_v14, %v2756_v40 }
 0x390   : > { %v1265_v52 = vrot.slane %v1264_v46, 1 }
 0x391   : > { %1300 = vperm.xlu1 %2061, %v1278_v48   ;;  %v1257_v50 = vadd.f32 %v1256_v47, %v1255_v45 }
 0x392   : > { %v2085_v54 = vpop.eup %2084  ;;  %v1266_v58 = vadd.f32 %v1265_v52, %v1264_v46 }
 0x393   : > { %v1277_v55 = vmul.f32 %v2085_v54, %v2760_v51  ;;  %v1258_v57 = vrot.slane %v1257_v50, 1 }
 0x395   : > { %1295 = vperm.xlu1 %2061, %v1277_v55   ;;  %v1259_v27 = vadd.f32 %v1258_v57, %v1257_v50 }
 0x397   : > { %v2087_v59 = vpop.eup %2086  ;;  %2090 = vrcp.f32 %v1259_v27 }
 0x398   : > { %v1280_v60 = vmul.f32 %v2087_v59, %v2071_v7  ;;  %v2089_v62 = vpop.eup %2088  ;;  %2092 = vrcp.f32 %v1266_v58 }
 0x399   : > { %v1279_v63 = vmul.f32 %v2089_v62, %v2073_v8 }
 0x39a   : > { %1310 = vperm.xlu1 %2061, %v1280_v60  }
 0x39e   : > { %1305 = vperm.xlu1 %2061, %v1279_v63  }
 0x3a1   : > { %v2091_v40 = vpop.eup %2090 }
 0x3a2   : > { %v1281_v2 = vmul.f32 %v2091_v40, %v2079_v33  ;;  %v2093_v3 = vpop.eup %2092 }
 0x3a3   : > { %v1282_v61 = vmul.f32 %v2093_v3, %v2075_v23 }
 0x3a4   : > { %1315 = vperm.xlu1 %2061, %v1281_v2  }
 0x3a8   : > { %1320 = vperm.xlu1 %2061, %v1282_v61  }
 0x409   : > { %v1291_v6 = vpop.permute.xlu1 %1290 }
 0x40a   : > { %v1324_v12 = vmul.f32 %v1291_v6, %v2711_v53 }
 0x40c   : > { %v1286_v51 = vpop.permute.xlu0 %1285  ;;  %v1337_v4 = vrot.slane %v1324_v12, 4 }
 0x40d   : > { %v1323_v9 = vmul.f32 %v1286_v51, %v2708_v49 }
 0x40e   : > { %v1338_v20 = vadd.f32 %v1337_v4, %v1324_v12 }
 0x40f   : > { %v1331_v13 = vrot.slane %v1323_v9, 4 }
 0x410   : > { %v1301_v11 = vpop.permute.xlu1 %1300  ;;  %v1339_v49 = vrot.slane %v1338_v20, 2 }
 0x411   : > { %v1326_v8 = vmul.f32 %v1301_v11, %v2717_v0  ;;  %v1332_v19 = vadd.f32 %v1331_v13, %v1323_v9 }
 0x412   : > { %v1340_v31 = vadd.f32 %v1339_v49, %v1338_v20 }
 0x413   : > { %v1349_v22 = vrot.slane %v1326_v8, 4  ;;  %v1333_v24 = vrot.slane %v1332_v19, 2 }
 0x414   : > { %v1296_v7 = vpop.permute.xlu1 %1295  ;;  %v1341_v39 = vrot.slane %v1340_v31, 1 }
 0x415   : > { %v1325_v16 = vmul.f32 %v1296_v7, %v2714_v56  ;;  %v1350_v53 = vadd.f32 %v1349_v22, %v1326_v8  ;;  %v1334_v30 = vadd.f32 %v1333_v24, %v1332_v19 }
 0x416   : > { %v1342_v47 = vadd.f32 %v1341_v39, %v1340_v31 }
 0x417   : > { %v1343_v18 = vrot.slane %v1325_v16, 4  ;;  %v1351_v32 = vrot.slane %v1350_v53, 2  ;;  %v1335_v37 = vrot.slane %v1334_v30, 1 }
 0x419   : > { %v1344_v21 = vadd.f32 %v1343_v18, %v1325_v16  ;;  %v1311_v1 = vpop.permute.xlu1 %1310  ;;  %v1352_v41 = vadd.f32 %v1351_v32, %v1350_v53 }
 0x41a   : > { %v1328_v23 = vmul.f32 %v1311_v1, %v2723_v10 }
 0x41b   : > { %v1345_v25 = vrot.slane %v1344_v21, 2  ;;  %v1353_v52 = vrot.slane %v1352_v41, 1 }
 0x41c   : > { %v1361_v28 = vrot.slane %v1328_v23, 4 }
 0x41d   : > { %v1306_v26 = vpop.permute.xlu1 %1305  ;;  %v1346_v0 = vadd.f32 %v1345_v25, %v1344_v21  ;;  %v1354_v62 = vadd.f32 %v1353_v52, %v1352_v41 }
 0x41e   : > { %v1327_v29 = vmul.f32 %v1306_v26, %v2720_v5  ;;  %v1362_v33 = vadd.f32 %v1361_v28, %v1328_v23  ;;  %v1336_v5 = vadd.f32 %v1335_v37, %v1334_v30 }
 0x41f   : > { %v1347_v35 = vrot.slane %v1346_v0, 1 }
 0x420   : > { %v1355_v56 = vrot.slane %v1327_v29, 4  ;;  %v1363_v43 = vrot.slane %v1362_v33, 2  ;;  %v1388_v57 = vsel %vm1387_vm2, %v1342_v47, %v1336_v5 }
 0x421   : > { %v1348_v48 = vadd.f32 %v1347_v35, %v1346_v0 }
 0x422   : > { %v1356_v34 = vadd.f32 %v1355_v56, %v1327_v29  ;;  %v1364_v54 = vadd.f32 %v1363_v43, %v1362_v33 }
 0x423   : > { %v1316_v36 = vpop.permute.xlu1 %1315  ;;  %v1390_v59 = vsel %vm1389_vm3, %v1348_v48, %v1388_v57 }
 0x424   : > { %v1357_v38 = vrot.slane %v1356_v34, 2  ;;  %v1329_v10 = vmul.f32 %v1316_v36, %v2726_v15  ;;  %v1365_v63 = vrot.slane %v1364_v54, 1  ;;  %v1392_v2 = vsel %vm1391_vm4, %v1354_v62, %v1390_v59 }
 0x426   : > { %v1358_v42 = vadd.f32 %v1357_v38, %v1356_v34  ;;  %v1367_v44 = vrot.slane %v1329_v10, 4  ;;  %v1366_v51 = vadd.f32 %v1365_v63, %v1364_v54 }
 0x427   : > { %v1321_v45 = vpop.permute.xlu1 %1320 }
 0x428   : > { %v1368_v14 = vadd.f32 %v1367_v44, %v1329_v10  ;;  %v1330_v46 = vmul.f32 %v1321_v45, %v2729_v17  ;;  %v1359_v50 = vrot.slane %v1358_v42, 1 }
 0x42a   : > { %v1369_v15 = vrot.slane %v1368_v14, 2  ;;  %v1373_v55 = vrot.slane %v1330_v46, 4  ;;  %v1360_v60 = vadd.f32 %v1359_v50, %v1358_v42 }
 0x42c   : > { %v1370_v27 = vadd.f32 %v1369_v15, %v1368_v14  ;;  %v1374_v58 = vadd.f32 %v1373_v55, %v1330_v46  ;;  %v1394_v61 = vsel %vm1393_vm5, %v1360_v60, %v1392_v2 }
 0x42d   : > { %v1396_v12 = vsel %vm1395_vm6, %v1366_v51, %v1394_v61 }
 0x42e   : > { %v1371_v17 = vrot.slane %v1370_v27, 1  ;;  %v1375_v40 = vrot.slane %v1374_v58, 2 }
 0x430   : > { %v1376_v3 = vadd.f32 %v1375_v40, %v1374_v58  ;;  %v1372_v6 = vadd.f32 %v1371_v17, %v1370_v27 }
 0x432   : > { %v1377_v9 = vrot.slane %v1376_v3, 1  ;;  %v1398_v13 = vsel %vm1397_vm7, %v1372_v6, %v1396_v12 }
 0x434   : > { %v1378_v11 = vadd.f32 %v1377_v9, %v1376_v3 }
 0x436   : > { %v1400_v7 = vsel %vm1399_vm8, %v1378_v11, %v1398_v13 }
 0x437   : > { %1402 = vst [vmem:[%s390_s20] sm:$0xff] %v1400_v7 }
 0x438   : > { %2277 = shalt.err (!%p2274_p8)
}
 0x439   : > { %s2278_s21 = scalar_lea.hbm %s2785_s6, 128  ;;  %s2282_s14 = scalar_lea.hbm %s2841_s7, 256 }
 0x43a   : > { %p2279_p3 = scmp.ne.s32.totalorder %s2785_s6, %s2278_s21  ;;  %p2283_p0 = scmp.lt.u32.totalorder %s2785_s6, %s2841_s7 }
 0x43b   : > { %p2284_p1 = scmp.lt.u32.totalorder %s2282_s14, %s2278_s21  ;;  %p2286_p6 = scmp.lt.u32.totalorder %s2278_s21, %s2785_s6 }
 0x43c   : > { %p2280_p12 = pnand %p2279_p3, %p2864_p5 }
 0x43d   : > { %p2285_p7 = por %p2284_p1, %p2283_p0 }
 0x43e   : > { %p2281_p13 = pneg %p2280_p12 }
 0x43f   : > { %p2287_p10 = por %p2286_p6, %p2285_p7 }
 0x441   : > { %p2288_p11 = pnand %p2287_p10, %p2281_p13 }
 0x443   : > { %2291 = shalt.err (!%p2288_p11)
}
 0x444   : > { %1964 = dma.vmem_to_hbm [thread:$0]  (%p2864_p5), %s2787_s18, 128, %s2785_s6, %s1404_s12  }
 0x445 PF: > { %s1429_s10 = sand.u32 1, %s2338_s26   ;;  %p2865_p2 = scmp.ne.s32.totalorder %s2860_s25, 0 }
 0x446   : > { %p2866_p4 = scmp.ge.s32.totalorder %s2358_s8, 2  ;;  %s1430_s20 = scalar_lea.sflag [#allocation6], %s1429_s10 }
 0x448   : > { %p1987_p9 = pnand %p2866_p4, %p2865_p2 }
 0x44a   : > { %2333 = dma.done.wait (!%p1987_p9), %s1430_s20, 128  }
 0x44b   : > { %2335 = vsyncadd (!%p1987_p9), %s1430_s20, 4294967168  ;;  %s28_s8 = sadd.s32 1, %s2358_s8   ;;  %s2867_s26 = smov %s2342_s27 }
 0x44c   : > { %p25_p8 = scmp.ge.s32.totalorder %s28_s8, 4   ;;  %s2868_s27 = smov %s2346_s28 }
 0x44d   : > { %s2869_s28 = smov %s2610_s24  ;;  %s2870_s29 = smov %s2354_s30 }
 0x44e   : > { %s2871_s30 = smov %s2873_s16  ;;  %27 = sbr.rel (!%p25_p8) target bundleno = 12 (0xc), region = 122 }
 0x455   :  { %1435 = vsyncpa [#allocation5], 1 }
 0x456   :  { %1437 = vsyncpa [#allocation5 + $0x1], 1 }
 0x457   :  { %1438 = vsyncpa [#allocation8], 1 }
 0x458   :  { %1439 = vsyncpa [#allocation11], 1 }
 0x459   :  { %1440 = vsyncpa [#allocation14], 1 }
 0x45a   :  { %1441 = vsyncpa [#allocation6], 1 }
 0x45b   :  { %1443 = vsyncpa [#allocation6 + $0x1], 1 }

</bundles_post_ra>
